<compile_context>
chip_gen: v5e
topology: v5e:2x2
jax: 0.10.0
libtpu: 0.0.40
codegen_flags: <defaults>
</compile_context>

<pallas_src>
import functools

import jax
import jax.numpy as jnp
from jax.experimental import pallas as pl
from jax.experimental.pallas import tpu as pltpu  # noqa: F401  (TPU backend assumed)


# ---------------------------------------------------------------------------
# Pallas kernels (single block: everything resident in VMEM)
# ---------------------------------------------------------------------------
def _conv_relu_pool_kernel(n_win, a_ref, w_ref, b_ref, o_ref):
    """Fused conv + bias + ReLU + 2x2 max-pool.

    a_ref : (n_win, K, Mp) bf16  im2col patches, one slab per pool-window offset
    w_ref : (Cout, K)      bf16
    b_ref : (Cout, 1)      f32
    o_ref : (Cout, Mp)     f32   = ReLU(max_w(W @ A_w) + b)
    """
    w = w_ref[...]
    m = jnp.dot(w, a_ref[0], preferred_element_type=jnp.float32)
    for k in range(1, n_win):
        m = jnp.maximum(m, jnp.dot(w, a_ref[k], preferred_element_type=jnp.float32))
    o_ref[...] = jnp.maximum(m + b_ref[...], 0.0)


def _deconv_phase_kernel(act, a_ref, w_ref, b_ref, o_ref):
    """Fused ConvTranspose (sub-pixel phase decomposition) + bias + activation.

    a_ref : (4, K, Mp)    bf16  per-phase im2col (K = Cin*2*2, no dilation zeros)
    w_ref : (4, Cout, K)  bf16  per-phase flipped 2x2 sub-kernels
    b_ref : (Cout, 1)     f32
    o_ref : (4, Cout, Mp) f32
    """
    for ph in range(4):
        acc = jnp.dot(w_ref[ph], a_ref[ph], preferred_element_type=jnp.float32)
        acc = acc + b_ref[...]
        acc = jnp.maximum(acc, 0.0) if act == "relu" else jnp.tanh(acc)
        o_ref[ph] = acc.astype(o_ref.dtype)


# ---------------------------------------------------------------------------
# im2col helpers (trace-time XLA glue; hot path stays inside the kernels)
# ---------------------------------------------------------------------------
def _conv_patches(x, kh, kw, stride, padding):
    """x:(N,C,H,W) -> patches (N, Ho, Wo, C*kh*kw), columns in (c, ki, kj) C-order."""
    N, C, H, W = x.shape
    xp = jnp.pad(x, ((0, 0), (0, 0), (padding, padding), (padding, padding)))
    Ho = (H + 2 * padding - kh) // stride + 1
    Wo = (W + 2 * padding - kw) // stride + 1
    cols = []
    for i in range(kh):
        for j in range(kw):
            cols.append(xp[:, :, i:i + stride * (Ho - 1) + 1:stride,
                              j:j + stride * (Wo - 1) + 1:stride])
    p = jnp.stack(cols, 0).transpose(1, 3, 4, 2, 0)          # (N, Ho, Wo, C, kh*kw)
    return p.reshape(N, Ho, Wo, C * kh * kw), Ho, Wo


def conv_relu_pool(x, w, b, *, stride, padding, pool_k, pool_stride):
    """Conv2d + ReLU + MaxPool2d(pool_k, pool_stride) in one pallas_call."""
    N, Cin, H, W_sp = x.shape
    Cout, _, kh, kw = w.shape
    K = Cin * kh * kw
    patches, Ho, Wo = _conv_patches(x, kh, kw, stride, padding)
    Hp = (Ho - pool_k) // pool_stride + 1
    Wp = (Wo - pool_k) // pool_stride + 1
    Mp = N * Hp * Wp
    groups = []
    for di in range(pool_k):
        for dj in range(pool_k):
            g = patches[:, di:di + pool_stride * (Hp - 1) + 1:pool_stride,
                           dj:dj + pool_stride * (Wp - 1) + 1:pool_stride, :]
            groups.append(g.reshape(Mp, K).T)                 # (K, Mp)
    A = jnp.stack(groups, 0).astype(jnp.bfloat16)             # (n_win, K, Mp)
    Wm = w.reshape(Cout, K).astype(jnp.bfloat16)
    bias = b.reshape(Cout, 1).astype(jnp.float32)
    out = pl.pallas_call(
        functools.partial(_conv_relu_pool_kernel, pool_k * pool_k),
        out_shape=jax.ShapeDtypeStruct((Cout, Mp), jnp.float32),
    )(A, Wm, bias)
    return out.reshape(Cout, N, Hp, Wp).transpose(1, 0, 2, 3)  # (N, Cout, Hp, Wp)


def deconv_act(x, w, b, *, padding, act):
    """PyTorch ConvTranspose2d(k=4, stride=2, padding) + activation.

    Sub-pixel decomposition: each output-parity phase (r, s) is an ordinary
    stride-1 2x2 conv with a flipped sub-kernel on the (pad-1) input; the four
    phase outputs are interleaved back into the full-resolution map.
    """
    N, Cin, H, W_sp = x.shape
    Cout = w.shape[1]
    K = Cin * 4
    xp = jnp.pad(x, ((0, 0), (0, 0), (1, 1), (1, 1)))
    if padding == 0:
        Hp, Wp = H + 1, W_sp + 1
        a_lo = (0, 0)          # window start offset into xp, per phase
    else:  # padding == 1
        Hp, Wp = H, W_sp
        a_lo = (1, 0)
    Mp = N * Hp * Wp
    A_list, W_list = [], []
    for r in (0, 1):
        for s in (0, 1):
            ah, aw = a_lo[r], a_lo[s]
            cols = []
            for oi in range(2):
                for oj in range(2):
                    cols.append(xp[:, :, ah + oi:ah + oi + Hp, aw + oj:aw + oj + Wp])
            a = jnp.stack(cols, 0).transpose(1, 3, 4, 2, 0).reshape(Mp, K).T
            A_list.append(a)
            # sub-kernel: Wsub[cout, cin, oi, oj] = w[cin, cout, r + 2*(1-oi), s + 2*(1-oj)]
            wsub = jnp.flip(w[:, :, r::2, s::2], axis=(2, 3))
            W_list.append(wsub.transpose(1, 0, 2, 3).reshape(Cout, K))
    A = jnp.stack(A_list, 0).astype(jnp.bfloat16)              # (4, K, Mp)
    Wm = jnp.stack(W_list, 0).astype(jnp.bfloat16)             # (4, Cout, K)
    bias = b.reshape(Cout, 1).astype(jnp.float32)
    out = pl.pallas_call(
        functools.partial(_deconv_phase_kernel, act),
        out_shape=jax.ShapeDtypeStruct((4, Cout, Mp), jnp.float32),
    )(A, Wm, bias)
    # interleave phases -> (N, Cout, 2*Hp, 2*Wp); axis-0/1 index must equal output parity
    t = out.reshape(2, 2, Cout, N, Hp, Wp)
    if padding == 1:
        t = t[::-1, ::-1]
    return t.transpose(3, 2, 4, 0, 5, 1).reshape(N, Cout, 2 * Hp, 2 * Wp)


# ---------------------------------------------------------------------------
# AE module forward
# ---------------------------------------------------------------------------
def init_params(key):
    def uniform(k, shape, fan_in):
        bound = 1.0 / jnp.sqrt(float(fan_in))
        return jax.random.uniform(k, shape, jnp.float32, -bound, bound)

    ks = jax.random.split(key, 10)
    p = {}
    # encoder
    p["w1"] = uniform(ks[0], (16, 3, 4, 4), 3 * 4 * 4)
    p["b1"] = uniform(ks[1], (16,), 3 * 4 * 4)
    p["w2"] = uniform(ks[2], (8, 16, 4, 4), 16 * 4 * 4)
    p["b2"] = uniform(ks[3], (8,), 16 * 4 * 4)
    # decoder (ConvTranspose2d weights are (C_in, C_out, kh, kw))
    p["wt1"] = uniform(ks[4], (8, 16, 4, 4), 8 * 4 * 4)
    p["bt1"] = uniform(ks[5], (16,), 8 * 4 * 4)
    p["wt2"] = uniform(ks[6], (16, 8, 4, 4), 16 * 4 * 4)
    p["bt2"] = uniform(ks[7], (8,), 16 * 4 * 4)
    p["wt3"] = uniform(ks[8], (8, 3, 4, 4), 8 * 4 * 4)
    p["bt3"] = uniform(ks[9], (3,), 8 * 4 * 4)
    return p


@jax.jit
def ae_forward(x, p):
    # encoder: Conv(3->16,s2,p1)+ReLU+MaxPool(2,2) ; Conv(16->8,s2,p1)+ReLU+MaxPool(2,1)
    x = conv_relu_pool(x, p["w1"], p["b1"], stride=2, padding=1, pool_k=2, pool_stride=2)  # (N,16,8,8)
    x = conv_relu_pool(x, p["w2"], p["b2"], stride=2, padding=1, pool_k=2, pool_stride=1)  # (N, 8,3,3)
    # decoder: ConvTranspose(8->16,s2)+ReLU ; (16->8,s2,p1)+ReLU ; (8->3,s2,p1)+Tanh
    x = deconv_act(x, p["wt1"], p["bt1"], padding=0, act="relu")   # (N,16, 8, 8)
    x = deconv_act(x, p["wt2"], p["bt2"], padding=1, act="relu")   # (N, 8,16,16)
    x = deconv_act(x, p["wt3"], p["bt3"], padding=1, act="tanh")   # (N, 3,32,32)
    return x


if __name__ == "__main__":
    key = jax.random.PRNGKey(0)
    k_x, k_p = jax.random.split(key)
    x = jax.random.normal(k_x, (2, 3, 32, 32), jnp.float32)  # NCHW, CIFAR-10 sized
    params = init_params(k_p)

    y = ae_forward(x, params)
    y = jax.block_until_ready(y)

    assert y.shape == (2, 3, 32, 32), y.shape
    assert bool(jnp.all(jnp.isfinite(y)))
    assert bool(jnp.all(jnp.abs(y) <= 1.0 + 1e-6))  # tanh output range
    print("KERNEL_OK")
</pallas_src>

<mosaic_0001>
module attributes {stable_mosaic.version = 11 : i64} {
  func.func @_conv_relu_pool_kernel(%arg0: memref<4x48x128xbf16, #tpu.memory_space<vmem>>, %arg1: memref<16x48xbf16, #tpu.memory_space<vmem>>, %arg2: memref<16x1xf32, #tpu.memory_space<vmem>>, %arg3: memref<16x128xf32, #tpu.memory_space<vmem>>) attributes {dimension_semantics = [], scalar_prefetch = 0 : i64, scratch_operands = 0 : i64, tpu.core_type = #tpu.core_type<tc>} {
    %c0 = arith.constant 0 : index
    %c0_0 = arith.constant 0 : index
    %0 = vector.load %arg1[%c0, %c0_0] : memref<16x48xbf16, #tpu.memory_space<vmem>>, vector<16x48xbf16>
    %c0_1 = arith.constant 0 : index
    %c0_2 = arith.constant 0 : index
    %c0_3 = arith.constant 0 : index
    %1 = vector.load %arg0[%c0_1, %c0_2, %c0_3] : memref<4x48x128xbf16, #tpu.memory_space<vmem>>, vector<1x48x128xbf16>
    %2 = vector.shape_cast %1 : vector<1x48x128xbf16> to vector<48x128xbf16>
    %cst = arith.constant dense<0.000000e+00> : vector<16x128xf32>
    %3 = tpu.matmul %0, %2, %cst {dimension_numbers = #tpu.dot_dimension_numbers<[1], [0], [0], [1], [0, 0, 1, 1], [], []>} : vector<16x48xbf16>, vector<48x128xbf16>, vector<16x128xf32> -> vector<16x128xf32>
    %c1 = arith.constant 1 : index
    %c0_4 = arith.constant 0 : index
    %c0_5 = arith.constant 0 : index
    %4 = vector.load %arg0[%c1, %c0_4, %c0_5] : memref<4x48x128xbf16, #tpu.memory_space<vmem>>, vector<1x48x128xbf16>
    %5 = vector.shape_cast %4 : vector<1x48x128xbf16> to vector<48x128xbf16>
    %cst_6 = arith.constant dense<0.000000e+00> : vector<16x128xf32>
    %6 = tpu.matmul %0, %5, %cst_6 {dimension_numbers = #tpu.dot_dimension_numbers<[1], [0], [0], [1], [0, 0, 1, 1], [], []>} : vector<16x48xbf16>, vector<48x128xbf16>, vector<16x128xf32> -> vector<16x128xf32>
    %7 = arith.maximumf %3, %6 : vector<16x128xf32>
    %c2 = arith.constant 2 : index
    %c0_7 = arith.constant 0 : index
    %c0_8 = arith.constant 0 : index
    %8 = vector.load %arg0[%c2, %c0_7, %c0_8] : memref<4x48x128xbf16, #tpu.memory_space<vmem>>, vector<1x48x128xbf16>
    %9 = vector.shape_cast %8 : vector<1x48x128xbf16> to vector<48x128xbf16>
    %cst_9 = arith.constant dense<0.000000e+00> : vector<16x128xf32>
    %10 = tpu.matmul %0, %9, %cst_9 {dimension_numbers = #tpu.dot_dimension_numbers<[1], [0], [0], [1], [0, 0, 1, 1], [], []>} : vector<16x48xbf16>, vector<48x128xbf16>, vector<16x128xf32> -> vector<16x128xf32>
    %11 = arith.maximumf %7, %10 : vector<16x128xf32>
    %c3 = arith.constant 3 : index
    %c0_10 = arith.constant 0 : index
    %c0_11 = arith.constant 0 : index
    %12 = vector.load %arg0[%c3, %c0_10, %c0_11] : memref<4x48x128xbf16, #tpu.memory_space<vmem>>, vector<1x48x128xbf16>
    %13 = vector.shape_cast %12 : vector<1x48x128xbf16> to vector<48x128xbf16>
    %cst_12 = arith.constant dense<0.000000e+00> : vector<16x128xf32>
    %14 = tpu.matmul %0, %13, %cst_12 {dimension_numbers = #tpu.dot_dimension_numbers<[1], [0], [0], [1], [0, 0, 1, 1], [], []>} : vector<16x48xbf16>, vector<48x128xbf16>, vector<16x128xf32> -> vector<16x128xf32>
    %15 = arith.maximumf %11, %14 : vector<16x128xf32>
    %c0_13 = arith.constant 0 : index
    %c0_14 = arith.constant 0 : index
    %16 = vector.load %arg2[%c0_13, %c0_14] : memref<16x1xf32, #tpu.memory_space<vmem>>, vector<16x1xf32>
    %17 = vector.broadcast %16 : vector<16x1xf32> to vector<16x128xf32>
    %18 = arith.addf %15, %17 : vector<16x128xf32>
    %cst_15 = arith.constant 0.000000e+00 : f32
    %19 = vector.broadcast %cst_15 : f32 to vector<16x128xf32>
    %20 = arith.maximumf %18, %19 : vector<16x128xf32>
    %c0_16 = arith.constant 0 : index
    %c0_17 = arith.constant 0 : index
    %21 = vector.load %arg3[%c0_16, %c0_17] : memref<16x128xf32, #tpu.memory_space<vmem>>, vector<16x128xf32>
    tpu.vector_store %arg3[%c0_16, %c0_17], %20 {strides = array<i32>} : memref<16x128xf32, #tpu.memory_space<vmem>>, vector<16x128xf32>,
    return
  }
}

module attributes {stable_mosaic.version = 11 : i64} {
  func.func @_conv_relu_pool_kernel(%arg0: memref<4x256x18xbf16, #tpu.memory_space<vmem>>, %arg1: memref<8x256xbf16, #tpu.memory_space<vmem>>, %arg2: memref<8x1xf32, #tpu.memory_space<vmem>>, %arg3: memref<8x18xf32, #tpu.memory_space<vmem>>) attributes {dimension_semantics = [], scalar_prefetch = 0 : i64, scratch_operands = 0 : i64, tpu.core_type = #tpu.core_type<tc>} {
    %c0 = arith.constant 0 : index
    %c0_0 = arith.constant 0 : index
    %0 = vector.load %arg1[%c0, %c0_0] : memref<8x256xbf16, #tpu.memory_space<vmem>>, vector<8x256xbf16>
    %c0_1 = arith.constant 0 : index
    %c0_2 = arith.constant 0 : index
    %c0_3 = arith.constant 0 : index
    %1 = vector.load %arg0[%c0_1, %c0_2, %c0_3] : memref<4x256x18xbf16, #tpu.memory_space<vmem>>, vector<1x256x18xbf16>
    %2 = vector.shape_cast %1 : vector<1x256x18xbf16> to vector<256x18xbf16>
    %cst = arith.constant dense<0.000000e+00> : vector<8x18xf32>
    %3 = tpu.matmul %0, %2, %cst {dimension_numbers = #tpu.dot_dimension_numbers<[1], [0], [0], [1], [0, 0, 1, 1], [], []>} : vector<8x256xbf16>, vector<256x18xbf16>, vector<8x18xf32> -> vector<8x18xf32>
    %c1 = arith.constant 1 : index
    %c0_4 = arith.constant 0 : index
    %c0_5 = arith.constant 0 : index
    %4 = vector.load %arg0[%c1, %c0_4, %c0_5] : memref<4x256x18xbf16, #tpu.memory_space<vmem>>, vector<1x256x18xbf16>
    %5 = vector.shape_cast %4 : vector<1x256x18xbf16> to vector<256x18xbf16>
    %cst_6 = arith.constant dense<0.000000e+00> : vector<8x18xf32>
    %6 = tpu.matmul %0, %5, %cst_6 {dimension_numbers = #tpu.dot_dimension_numbers<[1], [0], [0], [1], [0, 0, 1, 1], [], []>} : vector<8x256xbf16>, vector<256x18xbf16>, vector<8x18xf32> -> vector<8x18xf32>
    %7 = arith.maximumf %3, %6 : vector<8x18xf32>
    %c2 = arith.constant 2 : index
    %c0_7 = arith.constant 0 : index
    %c0_8 = arith.constant 0 : index
    %8 = vector.load %arg0[%c2, %c0_7, %c0_8] : memref<4x256x18xbf16, #tpu.memory_space<vmem>>, vector<1x256x18xbf16>
    %9 = vector.shape_cast %8 : vector<1x256x18xbf16> to vector<256x18xbf16>
    %cst_9 = arith.constant dense<0.000000e+00> : vector<8x18xf32>
    %10 = tpu.matmul %0, %9, %cst_9 {dimension_numbers = #tpu.dot_dimension_numbers<[1], [0], [0], [1], [0, 0, 1, 1], [], []>} : vector<8x256xbf16>, vector<256x18xbf16>, vector<8x18xf32> -> vector<8x18xf32>
    %11 = arith.maximumf %7, %10 : vector<8x18xf32>
    %c3 = arith.constant 3 : index
    %c0_10 = arith.constant 0 : index
    %c0_11 = arith.constant 0 : index
    %12 = vector.load %arg0[%c3, %c0_10, %c0_11] : memref<4x256x18xbf16, #tpu.memory_space<vmem>>, vector<1x256x18xbf16>
    %13 = vector.shape_cast %12 : vector<1x256x18xbf16> to vector<256x18xbf16>
    %cst_12 = arith.constant dense<0.000000e+00> : vector<8x18xf32>
    %14 = tpu.matmul %0, %13, %cst_12 {dimension_numbers = #tpu.dot_dimension_numbers<[1], [0], [0], [1], [0, 0, 1, 1], [], []>} : vector<8x256xbf16>, vector<256x18xbf16>, vector<8x18xf32> -> vector<8x18xf32>
    %15 = arith.maximumf %11, %14 : vector<8x18xf32>
    %c0_13 = arith.constant 0 : index
    %c0_14 = arith.constant 0 : index
    %16 = vector.load %arg2[%c0_13, %c0_14] : memref<8x1xf32, #tpu.memory_space<vmem>>, vector<8x1xf32>
    %17 = vector.broadcast %16 : vector<8x1xf32> to vector<8x18xf32>
    %18 = arith.addf %15, %17 : vector<8x18xf32>
    %cst_15 = arith.constant 0.000000e+00 : f32
    %19 = vector.broadcast %cst_15 : f32 to vector<8x18xf32>
    %20 = arith.maximumf %18, %19 : vector<8x18xf32>
    %c0_16 = arith.constant 0 : index
    %c0_17 = arith.constant 0 : index
    %21 = vector.load %arg3[%c0_16, %c0_17] : memref<8x18xf32, #tpu.memory_space<vmem>>, vector<8x18xf32>
    tpu.vector_store %arg3[%c0_16, %c0_17], %20 {strides = array<i32>} : memref<8x18xf32, #tpu.memory_space<vmem>>, vector<8x18xf32>,
    return
  }
}

module attributes {stable_mosaic.version = 11 : i64} {
  func.func @_deconv_phase_kernel(%arg0: memref<4x32x32xbf16, #tpu.memory_space<vmem>>, %arg1: memref<4x16x32xbf16, #tpu.memory_space<vmem>>, %arg2: memref<16x1xf32, #tpu.memory_space<vmem>>, %arg3: memref<4x16x32xf32, #tpu.memory_space<vmem>>) attributes {dimension_semantics = [], scalar_prefetch = 0 : i64, scratch_operands = 0 : i64, tpu.core_type = #tpu.core_type<tc>} {
    %c0 = arith.constant 0 : index
    %c0_0 = arith.constant 0 : index
    %c0_1 = arith.constant 0 : index
    %0 = vector.load %arg1[%c0, %c0_0, %c0_1] : memref<4x16x32xbf16, #tpu.memory_space<vmem>>, vector<1x16x32xbf16>
    %1 = vector.shape_cast %0 : vector<1x16x32xbf16> to vector<16x32xbf16>
    %c0_2 = arith.constant 0 : index
    %c0_3 = arith.constant 0 : index
    %c0_4 = arith.constant 0 : index
    %2 = vector.load %arg0[%c0_2, %c0_3, %c0_4] : memref<4x32x32xbf16, #tpu.memory_space<vmem>>, vector<1x32x32xbf16>
    %3 = vector.shape_cast %2 : vector<1x32x32xbf16> to vector<32x32xbf16>
    %cst = arith.constant dense<0.000000e+00> : vector<16x32xf32>
    %4 = tpu.matmul %1, %3, %cst {dimension_numbers = #tpu.dot_dimension_numbers<[1], [0], [0], [1], [0, 0, 1, 1], [], []>} : vector<16x32xbf16>, vector<32x32xbf16>, vector<16x32xf32> -> vector<16x32xf32>
    %c0_5 = arith.constant 0 : index
    %c0_6 = arith.constant 0 : index
    %5 = vector.load %arg2[%c0_5, %c0_6] : memref<16x1xf32, #tpu.memory_space<vmem>>, vector<16x1xf32>
    %6 = vector.broadcast %5 : vector<16x1xf32> to vector<16x32xf32>
    %7 = arith.addf %4, %6 : vector<16x32xf32>
    %cst_7 = arith.constant 0.000000e+00 : f32
    %8 = vector.broadcast %cst_7 : f32 to vector<16x32xf32>
    %9 = arith.maximumf %7, %8 : vector<16x32xf32>
    %c0_8 = arith.constant 0 : index
    %c0_9 = arith.constant 0 : index
    %c0_10 = arith.constant 0 : index
    %10 = vector.load %arg3[%c0_8, %c0_9, %c0_10] : memref<4x16x32xf32, #tpu.memory_space<vmem>>, vector<1x16x32xf32>
    %11 = vector.shape_cast %10 : vector<1x16x32xf32> to vector<16x32xf32>
    %12 = vector.shape_cast %9 : vector<16x32xf32> to vector<1x16x32xf32>
    tpu.vector_store %arg3[%c0_8, %c0_9, %c0_10], %12 {strides = array<i32>} : memref<4x16x32xf32, #tpu.memory_space<vmem>>, vector<1x16x32xf32>,
    %c1 = arith.constant 1 : index
    %c0_11 = arith.constant 0 : index
    %c0_12 = arith.constant 0 : index
    %13 = vector.load %arg1[%c1, %c0_11, %c0_12] : memref<4x16x32xbf16, #tpu.memory_space<vmem>>, vector<1x16x32xbf16>
    %14 = vector.shape_cast %13 : vector<1x16x32xbf16> to vector<16x32xbf16>
    %c1_13 = arith.constant 1 : index
    %c0_14 = arith.constant 0 : index
    %c0_15 = arith.constant 0 : index
    %15 = vector.load %arg0[%c1_13, %c0_14, %c0_15] : memref<4x32x32xbf16, #tpu.memory_space<vmem>>, vector<1x32x32xbf16>
    %16 = vector.shape_cast %15 : vector<1x32x32xbf16> to vector<32x32xbf16>
    %cst_16 = arith.constant dense<0.000000e+00> : vector<16x32xf32>
    %17 = tpu.matmul %14, %16, %cst_16 {dimension_numbers = #tpu.dot_dimension_numbers<[1], [0], [0], [1], [0, 0, 1, 1], [], []>} : vector<16x32xbf16>, vector<32x32xbf16>, vector<16x32xf32> -> vector<16x32xf32>
    %c0_17 = arith.constant 0 : index
    %c0_18 = arith.constant 0 : index
    %18 = vector.load %arg2[%c0_17, %c0_18] : memref<16x1xf32, #tpu.memory_space<vmem>>, vector<16x1xf32>
    %19 = vector.broadcast %18 : vector<16x1xf32> to vector<16x32xf32>
    %20 = arith.addf %17, %19 : vector<16x32xf32>
    %cst_19 = arith.constant 0.000000e+00 : f32
    %21 = vector.broadcast %cst_19 : f32 to vector<16x32xf32>
    %22 = arith.maximumf %20, %21 : vector<16x32xf32>
    %c1_20 = arith.constant 1 : index
    %c0_21 = arith.constant 0 : index
    %c0_22 = arith.constant 0 : index
    %23 = vector.load %arg3[%c1_20, %c0_21, %c0_22] : memref<4x16x32xf32, #tpu.memory_space<vmem>>, vector<1x16x32xf32>
    %24 = vector.shape_cast %23 : vector<1x16x32xf32> to vector<16x32xf32>
    %25 = vector.shape_cast %22 : vector<16x32xf32> to vector<1x16x32xf32>
    tpu.vector_store %arg3[%c1_20, %c0_21, %c0_22], %25 {strides = array<i32>} : memref<4x16x32xf32, #tpu.memory_space<vmem>>, vector<1x16x32xf32>,
    %c2 = arith.constant 2 : index
    %c0_23 = arith.constant 0 : index
    %c0_24 = arith.constant 0 : index
    %26 = vector.load %arg1[%c2, %c0_23, %c0_24] : memref<4x16x32xbf16, #tpu.memory_space<vmem>>, vector<1x16x32xbf16>
    %27 = vector.shape_cast %26 : vector<1x16x32xbf16> to vector<16x32xbf16>
    %c2_25 = arith.constant 2 : index
    %c0_26 = arith.constant 0 : index
    %c0_27 = arith.constant 0 : index
    %28 = vector.load %arg0[%c2_25, %c0_26, %c0_27] : memref<4x32x32xbf16, #tpu.memory_space<vmem>>, vector<1x32x32xbf16>
    %29 = vector.shape_cast %28 : vector<1x32x32xbf16> to vector<32x32xbf16>
    %cst_28 = arith.constant dense<0.000000e+00> : vector<16x32xf32>
    %30 = tpu.matmul %27, %29, %cst_28 {dimension_numbers = #tpu.dot_dimension_numbers<[1], [0], [0], [1], [0, 0, 1, 1], [], []>} : vector<16x32xbf16>, vector<32x32xbf16>, vector<16x32xf32> -> vector<16x32xf32>
    %c0_29 = arith.constant 0 : index
    %c0_30 = arith.constant 0 : index
    %31 = vector.load %arg2[%c0_29, %c0_30] : memref<16x1xf32, #tpu.memory_space<vmem>>, vector<16x1xf32>
    %32 = vector.broadcast %31 : vector<16x1xf32> to vector<16x32xf32>
    %33 = arith.addf %30, %32 : vector<16x32xf32>
    %cst_31 = arith.constant 0.000000e+00 : f32
    %34 = vector.broadcast %cst_31 : f32 to vector<16x32xf32>
    %35 = arith.maximumf %33, %34 : vector<16x32xf32>
    %c2_32 = arith.constant 2 : index
    %c0_33 = arith.constant 0 : index
    %c0_34 = arith.constant 0 : index
    %36 = vector.load %arg3[%c2_32, %c0_33, %c0_34] : memref<4x16x32xf32, #tpu.memory_space<vmem>>, vector<1x16x32xf32>
    %37 = vector.shape_cast %36 : vector<1x16x32xf32> to vector<16x32xf32>
    %38 = vector.shape_cast %35 : vector<16x32xf32> to vector<1x16x32xf32>
    tpu.vector_store %arg3[%c2_32, %c0_33, %c0_34], %38 {strides = array<i32>} : memref<4x16x32xf32, #tpu.memory_space<vmem>>, vector<1x16x32xf32>,
    %c3 = arith.constant 3 : index
    %c0_35 = arith.constant 0 : index
    %c0_36 = arith.constant 0 : index
    %39 = vector.load %arg1[%c3, %c0_35, %c0_36] : memref<4x16x32xbf16, #tpu.memory_space<vmem>>, vector<1x16x32xbf16>
    %40 = vector.shape_cast %39 : vector<1x16x32xbf16> to vector<16x32xbf16>
    %c3_37 = arith.constant 3 : index
    %c0_38 = arith.constant 0 : index
    %c0_39 = arith.constant 0 : index
    %41 = vector.load %arg0[%c3_37, %c0_38, %c0_39] : memref<4x32x32xbf16, #tpu.memory_space<vmem>>, vector<1x32x32xbf16>
    %42 = vector.shape_cast %41 : vector<1x32x32xbf16> to vector<32x32xbf16>
    %cst_40 = arith.constant dense<0.000000e+00> : vector<16x32xf32>
    %43 = tpu.matmul %40, %42, %cst_40 {dimension_numbers = #tpu.dot_dimension_numbers<[1], [0], [0], [1], [0, 0, 1, 1], [], []>} : vector<16x32xbf16>, vector<32x32xbf16>, vector<16x32xf32> -> vector<16x32xf32>
    %c0_41 = arith.constant 0 : index
    %c0_42 = arith.constant 0 : index
    %44 = vector.load %arg2[%c0_41, %c0_42] : memref<16x1xf32, #tpu.memory_space<vmem>>, vector<16x1xf32>
    %45 = vector.broadcast %44 : vector<16x1xf32> to vector<16x32xf32>
    %46 = arith.addf %43, %45 : vector<16x32xf32>
    %cst_43 = arith.constant 0.000000e+00 : f32
    %47 = vector.broadcast %cst_43 : f32 to vector<16x32xf32>
    %48 = arith.maximumf %46, %47 : vector<16x32xf32>
    %c3_44 = arith.constant 3 : index
    %c0_45 = arith.constant 0 : index
    %c0_46 = arith.constant 0 : index
    %49 = vector.load %arg3[%c3_44, %c0_45, %c0_46] : memref<4x16x32xf32, #tpu.memory_space<vmem>>, vector<1x16x32xf32>
    %50 = vector.shape_cast %49 : vector<1x16x32xf32> to vector<16x32xf32>
    %51 = vector.shape_cast %48 : vector<16x32xf32> to vector<1x16x32xf32>
    tpu.vector_store %arg3[%c3_44, %c0_45, %c0_46], %51 {strides = array<i32>} : memref<4x16x32xf32, #tpu.memory_space<vmem>>, vector<1x16x32xf32>,
    return
  }
}

module attributes {stable_mosaic.version = 11 : i64} {
  func.func @_deconv_phase_kernel(%arg0: memref<4x64x128xbf16, #tpu.memory_space<vmem>>, %arg1: memref<4x8x64xbf16, #tpu.memory_space<vmem>>, %arg2: memref<8x1xf32, #tpu.memory_space<vmem>>, %arg3: memref<4x8x128xf32, #tpu.memory_space<vmem>>) attributes {dimension_semantics = [], scalar_prefetch = 0 : i64, scratch_operands = 0 : i64, tpu.core_type = #tpu.core_type<tc>} {
    %c0 = arith.constant 0 : index
    %c0_0 = arith.constant 0 : index
    %c0_1 = arith.constant 0 : index
    %0 = vector.load %arg1[%c0, %c0_0, %c0_1] : memref<4x8x64xbf16, #tpu.memory_space<vmem>>, vector<1x8x64xbf16>
    %1 = vector.shape_cast %0 : vector<1x8x64xbf16> to vector<8x64xbf16>
    %c0_2 = arith.constant 0 : index
    %c0_3 = arith.constant 0 : index
    %c0_4 = arith.constant 0 : index
    %2 = vector.load %arg0[%c0_2, %c0_3, %c0_4] : memref<4x64x128xbf16, #tpu.memory_space<vmem>>, vector<1x64x128xbf16>
    %3 = vector.shape_cast %2 : vector<1x64x128xbf16> to vector<64x128xbf16>
    %cst = arith.constant dense<0.000000e+00> : vector<8x128xf32>
    %4 = tpu.matmul %1, %3, %cst {dimension_numbers = #tpu.dot_dimension_numbers<[1], [0], [0], [1], [0, 0, 1, 1], [], []>} : vector<8x64xbf16>, vector<64x128xbf16>, vector<8x128xf32> -> vector<8x128xf32>
    %c0_5 = arith.constant 0 : index
    %c0_6 = arith.constant 0 : index
    %5 = vector.load %arg2[%c0_5, %c0_6] : memref<8x1xf32, #tpu.memory_space<vmem>>, vector<8x1xf32>
    %6 = vector.broadcast %5 : vector<8x1xf32> to vector<8x128xf32>
    %7 = arith.addf %4, %6 : vector<8x128xf32>
    %cst_7 = arith.constant 0.000000e+00 : f32
    %8 = vector.broadcast %cst_7 : f32 to vector<8x128xf32>
    %9 = arith.maximumf %7, %8 : vector<8x128xf32>
    %c0_8 = arith.constant 0 : index
    %c0_9 = arith.constant 0 : index
    %c0_10 = arith.constant 0 : index
    %10 = vector.load %arg3[%c0_8, %c0_9, %c0_10] : memref<4x8x128xf32, #tpu.memory_space<vmem>>, vector<1x8x128xf32>
    %11 = vector.shape_cast %10 : vector<1x8x128xf32> to vector<8x128xf32>
    %12 = vector.shape_cast %9 : vector<8x128xf32> to vector<1x8x128xf32>
    tpu.vector_store %arg3[%c0_8, %c0_9, %c0_10], %12 {strides = array<i32>} : memref<4x8x128xf32, #tpu.memory_space<vmem>>, vector<1x8x128xf32>,
    %c1 = arith.constant 1 : index
    %c0_11 = arith.constant 0 : index
    %c0_12 = arith.constant 0 : index
    %13 = vector.load %arg1[%c1, %c0_11, %c0_12] : memref<4x8x64xbf16, #tpu.memory_space<vmem>>, vector<1x8x64xbf16>
    %14 = vector.shape_cast %13 : vector<1x8x64xbf16> to vector<8x64xbf16>
    %c1_13 = arith.constant 1 : index
    %c0_14 = arith.constant 0 : index
    %c0_15 = arith.constant 0 : index
    %15 = vector.load %arg0[%c1_13, %c0_14, %c0_15] : memref<4x64x128xbf16, #tpu.memory_space<vmem>>, vector<1x64x128xbf16>
    %16 = vector.shape_cast %15 : vector<1x64x128xbf16> to vector<64x128xbf16>
    %cst_16 = arith.constant dense<0.000000e+00> : vector<8x128xf32>
    %17 = tpu.matmul %14, %16, %cst_16 {dimension_numbers = #tpu.dot_dimension_numbers<[1], [0], [0], [1], [0, 0, 1, 1], [], []>} : vector<8x64xbf16>, vector<64x128xbf16>, vector<8x128xf32> -> vector<8x128xf32>
    %c0_17 = arith.constant 0 : index
    %c0_18 = arith.constant 0 : index
    %18 = vector.load %arg2[%c0_17, %c0_18] : memref<8x1xf32, #tpu.memory_space<vmem>>, vector<8x1xf32>
    %19 = vector.broadcast %18 : vector<8x1xf32> to vector<8x128xf32>
    %20 = arith.addf %17, %19 : vector<8x128xf32>
    %cst_19 = arith.constant 0.000000e+00 : f32
    %21 = vector.broadcast %cst_19 : f32 to vector<8x128xf32>
    %22 = arith.maximumf %20, %21 : vector<8x128xf32>
    %c1_20 = arith.constant 1 : index
    %c0_21 = arith.constant 0 : index
    %c0_22 = arith.constant 0 : index
    %23 = vector.load %arg3[%c1_20, %c0_21, %c0_22] : memref<4x8x128xf32, #tpu.memory_space<vmem>>, vector<1x8x128xf32>
    %24 = vector.shape_cast %23 : vector<1x8x128xf32> to vector<8x128xf32>
    %25 = vector.shape_cast %22 : vector<8x128xf32> to vector<1x8x128xf32>
    tpu.vector_store %arg3[%c1_20, %c0_21, %c0_22], %25 {strides = array<i32>} : memref<4x8x128xf32, #tpu.memory_space<vmem>>, vector<1x8x128xf32>,
    %c2 = arith.constant 2 : index
    %c0_23 = arith.constant 0 : index
    %c0_24 = arith.constant 0 : index
    %26 = vector.load %arg1[%c2, %c0_23, %c0_24] : memref<4x8x64xbf16, #tpu.memory_space<vmem>>, vector<1x8x64xbf16>
    %27 = vector.shape_cast %26 : vector<1x8x64xbf16> to vector<8x64xbf16>
    %c2_25 = arith.constant 2 : index
    %c0_26 = arith.constant 0 : index
    %c0_27 = arith.constant 0 : index
    %28 = vector.load %arg0[%c2_25, %c0_26, %c0_27] : memref<4x64x128xbf16, #tpu.memory_space<vmem>>, vector<1x64x128xbf16>
    %29 = vector.shape_cast %28 : vector<1x64x128xbf16> to vector<64x128xbf16>
    %cst_28 = arith.constant dense<0.000000e+00> : vector<8x128xf32>
    %30 = tpu.matmul %27, %29, %cst_28 {dimension_numbers = #tpu.dot_dimension_numbers<[1], [0], [0], [1], [0, 0, 1, 1], [], []>} : vector<8x64xbf16>, vector<64x128xbf16>, vector<8x128xf32> -> vector<8x128xf32>
    %c0_29 = arith.constant 0 : index
    %c0_30 = arith.constant 0 : index
    %31 = vector.load %arg2[%c0_29, %c0_30] : memref<8x1xf32, #tpu.memory_space<vmem>>, vector<8x1xf32>
    %32 = vector.broadcast %31 : vector<8x1xf32> to vector<8x128xf32>
    %33 = arith.addf %30, %32 : vector<8x128xf32>
    %cst_31 = arith.constant 0.000000e+00 : f32
    %34 = vector.broadcast %cst_31 : f32 to vector<8x128xf32>
    %35 = arith.maximumf %33, %34 : vector<8x128xf32>
    %c2_32 = arith.constant 2 : index
    %c0_33 = arith.constant 0 : index
    %c0_34 = arith.constant 0 : index
    %36 = vector.load %arg3[%c2_32, %c0_33, %c0_34] : memref<4x8x128xf32, #tpu.memory_space<vmem>>, vector<1x8x128xf32>
    %37 = vector.shape_cast %36 : vector<1x8x128xf32> to vector<8x128xf32>
    %38 = vector.shape_cast %35 : vector<8x128xf32> to vector<1x8x128xf32>
    tpu.vector_store %arg3[%c2_32, %c0_33, %c0_34], %38 {strides = array<i32>} : memref<4x8x128xf32, #tpu.memory_space<vmem>>, vector<1x8x128xf32>,
    %c3 = arith.constant 3 : index
    %c0_35 = arith.constant 0 : index
    %c0_36 = arith.constant 0 : index
    %39 = vector.load %arg1[%c3, %c0_35, %c0_36] : memref<4x8x64xbf16, #tpu.memory_space<vmem>>, vector<1x8x64xbf16>
    %40 = vector.shape_cast %39 : vector<1x8x64xbf16> to vector<8x64xbf16>
    %c3_37 = arith.constant 3 : index
    %c0_38 = arith.constant 0 : index
    %c0_39 = arith.constant 0 : index
    %41 = vector.load %arg0[%c3_37, %c0_38, %c0_39] : memref<4x64x128xbf16, #tpu.memory_space<vmem>>, vector<1x64x128xbf16>
    %42 = vector.shape_cast %41 : vector<1x64x128xbf16> to vector<64x128xbf16>
    %cst_40 = arith.constant dense<0.000000e+00> : vector<8x128xf32>
    %43 = tpu.matmul %40, %42, %cst_40 {dimension_numbers = #tpu.dot_dimension_numbers<[1], [0], [0], [1], [0, 0, 1, 1], [], []>} : vector<8x64xbf16>, vector<64x128xbf16>, vector<8x128xf32> -> vector<8x128xf32>
    %c0_41 = arith.constant 0 : index
    %c0_42 = arith.constant 0 : index
    %44 = vector.load %arg2[%c0_41, %c0_42] : memref<8x1xf32, #tpu.memory_space<vmem>>, vector<8x1xf32>
    %45 = vector.broadcast %44 : vector<8x1xf32> to vector<8x128xf32>
    %46 = arith.addf %43, %45 : vector<8x128xf32>
    %cst_43 = arith.constant 0.000000e+00 : f32
    %47 = vector.broadcast %cst_43 : f32 to vector<8x128xf32>
    %48 = arith.maximumf %46, %47 : vector<8x128xf32>
    %c3_44 = arith.constant 3 : index
    %c0_45 = arith.constant 0 : index
    %c0_46 = arith.constant 0 : index
    %49 = vector.load %arg3[%c3_44, %c0_45, %c0_46] : memref<4x8x128xf32, #tpu.memory_space<vmem>>, vector<1x8x128xf32>
    %50 = vector.shape_cast %49 : vector<1x8x128xf32> to vector<8x128xf32>
    %51 = vector.shape_cast %48 : vector<8x128xf32> to vector<1x8x128xf32>
    tpu.vector_store %arg3[%c3_44, %c0_45, %c0_46], %51 {strides = array<i32>} : memref<4x8x128xf32, #tpu.memory_space<vmem>>, vector<1x8x128xf32>,
    return
  }
}

module attributes {stable_mosaic.version = 11 : i64} {
  func.func @_deconv_phase_kernel(%arg0: memref<4x32x512xbf16, #tpu.memory_space<vmem>>, %arg1: memref<4x3x32xbf16, #tpu.memory_space<vmem>>, %arg2: memref<3x1xf32, #tpu.memory_space<vmem>>, %arg3: memref<4x3x512xf32, #tpu.memory_space<vmem>>) attributes {dimension_semantics = [], scalar_prefetch = 0 : i64, scratch_operands = 0 : i64, tpu.core_type = #tpu.core_type<tc>} {
    %c0 = arith.constant 0 : index
    %c0_0 = arith.constant 0 : index
    %c0_1 = arith.constant 0 : index
    %0 = vector.load %arg1[%c0, %c0_0, %c0_1] : memref<4x3x32xbf16, #tpu.memory_space<vmem>>, vector<1x3x32xbf16>
    %1 = vector.shape_cast %0 : vector<1x3x32xbf16> to vector<3x32xbf16>
    %c0_2 = arith.constant 0 : index
    %c0_3 = arith.constant 0 : index
    %c0_4 = arith.constant 0 : index
    %2 = vector.load %arg0[%c0_2, %c0_3, %c0_4] : memref<4x32x512xbf16, #tpu.memory_space<vmem>>, vector<1x32x512xbf16>
    %3 = vector.shape_cast %2 : vector<1x32x512xbf16> to vector<32x512xbf16>
    %cst = arith.constant dense<0.000000e+00> : vector<3x512xf32>
    %4 = tpu.matmul %1, %3, %cst {dimension_numbers = #tpu.dot_dimension_numbers<[1], [0], [0], [1], [0, 0, 1, 1], [], []>} : vector<3x32xbf16>, vector<32x512xbf16>, vector<3x512xf32> -> vector<3x512xf32>
    %c0_5 = arith.constant 0 : index
    %c0_6 = arith.constant 0 : index
    %5 = vector.load %arg2[%c0_5, %c0_6] : memref<3x1xf32, #tpu.memory_space<vmem>>, vector<3x1xf32>
    %6 = vector.broadcast %5 : vector<3x1xf32> to vector<3x512xf32>
    %7 = arith.addf %4, %6 : vector<3x512xf32>
    %8 = math.tanh %7 : vector<3x512xf32>
    %c0_7 = arith.constant 0 : index
    %c0_8 = arith.constant 0 : index
    %c0_9 = arith.constant 0 : index
    %9 = vector.load %arg3[%c0_7, %c0_8, %c0_9] : memref<4x3x512xf32, #tpu.memory_space<vmem>>, vector<1x3x512xf32>
    %10 = vector.shape_cast %9 : vector<1x3x512xf32> to vector<3x512xf32>
    %11 = vector.shape_cast %8 : vector<3x512xf32> to vector<1x3x512xf32>
    tpu.vector_store %arg3[%c0_7, %c0_8, %c0_9], %11 {strides = array<i32>} : memref<4x3x512xf32, #tpu.memory_space<vmem>>, vector<1x3x512xf32>,
    %c1 = arith.constant 1 : index
    %c0_10 = arith.constant 0 : index
    %c0_11 = arith.constant 0 : index
    %12 = vector.load %arg1[%c1, %c0_10, %c0_11] : memref<4x3x32xbf16, #tpu.memory_space<vmem>>, vector<1x3x32xbf16>
    %13 = vector.shape_cast %12 : vector<1x3x32xbf16> to vector<3x32xbf16>
    %c1_12 = arith.constant 1 : index
    %c0_13 = arith.constant 0 : index
    %c0_14 = arith.constant 0 : index
    %14 = vector.load %arg0[%c1_12, %c0_13, %c0_14] : memref<4x32x512xbf16, #tpu.memory_space<vmem>>, vector<1x32x512xbf16>
    %15 = vector.shape_cast %14 : vector<1x32x512xbf16> to vector<32x512xbf16>
    %cst_15 = arith.constant dense<0.000000e+00> : vector<3x512xf32>
    %16 = tpu.matmul %13, %15, %cst_15 {dimension_numbers = #tpu.dot_dimension_numbers<[1], [0], [0], [1], [0, 0, 1, 1], [], []>} : vector<3x32xbf16>, vector<32x512xbf16>, vector<3x512xf32> -> vector<3x512xf32>
    %c0_16 = arith.constant 0 : index
    %c0_17 = arith.constant 0 : index
    %17 = vector.load %arg2[%c0_16, %c0_17] : memref<3x1xf32, #tpu.memory_space<vmem>>, vector<3x1xf32>
    %18 = vector.broadcast %17 : vector<3x1xf32> to vector<3x512xf32>
    %19 = arith.addf %16, %18 : vector<3x512xf32>
    %20 = math.tanh %19 : vector<3x512xf32>
    %c1_18 = arith.constant 1 : index
    %c0_19 = arith.constant 0 : index
    %c0_20 = arith.constant 0 : index
    %21 = vector.load %arg3[%c1_18, %c0_19, %c0_20] : memref<4x3x512xf32, #tpu.memory_space<vmem>>, vector<1x3x512xf32>
    %22 = vector.shape_cast %21 : vector<1x3x512xf32> to vector<3x512xf32>
    %23 = vector.shape_cast %20 : vector<3x512xf32> to vector<1x3x512xf32>
    tpu.vector_store %arg3[%c1_18, %c0_19, %c0_20], %23 {strides = array<i32>} : memref<4x3x512xf32, #tpu.memory_space<vmem>>, vector<1x3x512xf32>,
    %c2 = arith.constant 2 : index
    %c0_21 = arith.constant 0 : index
    %c0_22 = arith.constant 0 : index
    %24 = vector.load %arg1[%c2, %c0_21, %c0_22] : memref<4x3x32xbf16, #tpu.memory_space<vmem>>, vector<1x3x32xbf16>
    %25 = vector.shape_cast %24 : vector<1x3x32xbf16> to vector<3x32xbf16>
    %c2_23 = arith.constant 2 : index
    %c0_24 = arith.constant 0 : index
    %c0_25 = arith.constant 0 : index
    %26 = vector.load %arg0[%c2_23, %c0_24, %c0_25] : memref<4x32x512xbf16, #tpu.memory_space<vmem>>, vector<1x32x512xbf16>
    %27 = vector.shape_cast %26 : vector<1x32x512xbf16> to vector<32x512xbf16>
    %cst_26 = arith.constant dense<0.000000e+00> : vector<3x512xf32>
    %28 = tpu.matmul %25, %27, %cst_26 {dimension_numbers = #tpu.dot_dimension_numbers<[1], [0], [0], [1], [0, 0, 1, 1], [], []>} : vector<3x32xbf16>, vector<32x512xbf16>, vector<3x512xf32> -> vector<3x512xf32>
    %c0_27 = arith.constant 0 : index
    %c0_28 = arith.constant 0 : index
    %29 = vector.load %arg2[%c0_27, %c0_28] : memref<3x1xf32, #tpu.memory_space<vmem>>, vector<3x1xf32>
    %30 = vector.broadcast %29 : vector<3x1xf32> to vector<3x512xf32>
    %31 = arith.addf %28, %30 : vector<3x512xf32>
    %32 = math.tanh %31 : vector<3x512xf32>
    %c2_29 = arith.constant 2 : index
    %c0_30 = arith.constant 0 : index
    %c0_31 = arith.constant 0 : index
    %33 = vector.load %arg3[%c2_29, %c0_30, %c0_31] : memref<4x3x512xf32, #tpu.memory_space<vmem>>, vector<1x3x512xf32>
    %34 = vector.shape_cast %33 : vector<1x3x512xf32> to vector<3x512xf32>
    %35 = vector.shape_cast %32 : vector<3x512xf32> to vector<1x3x512xf32>
    tpu.vector_store %arg3[%c2_29, %c0_30, %c0_31], %35 {strides = array<i32>} : memref<4x3x512xf32, #tpu.memory_space<vmem>>, vector<1x3x512xf32>,
    %c3 = arith.constant 3 : index
    %c0_32 = arith.constant 0 : index
    %c0_33 = arith.constant 0 : index
    %36 = vector.load %arg1[%c3, %c0_32, %c0_33] : memref<4x3x32xbf16, #tpu.memory_space<vmem>>, vector<1x3x32xbf16>
    %37 = vector.shape_cast %36 : vector<1x3x32xbf16> to vector<3x32xbf16>
    %c3_34 = arith.constant 3 : index
    %c0_35 = arith.constant 0 : index
    %c0_36 = arith.constant 0 : index
    %38 = vector.load %arg0[%c3_34, %c0_35, %c0_36] : memref<4x32x512xbf16, #tpu.memory_space<vmem>>, vector<1x32x512xbf16>
    %39 = vector.shape_cast %38 : vector<1x32x512xbf16> to vector<32x512xbf16>
    %cst_37 = arith.constant dense<0.000000e+00> : vector<3x512xf32>
    %40 = tpu.matmul %37, %39, %cst_37 {dimension_numbers = #tpu.dot_dimension_numbers<[1], [0], [0], [1], [0, 0, 1, 1], [], []>} : vector<3x32xbf16>, vector<32x512xbf16>, vector<3x512xf32> -> vector<3x512xf32>
    %c0_38 = arith.constant 0 : index
    %c0_39 = arith.constant 0 : index
    %41 = vector.load %arg2[%c0_38, %c0_39] : memref<3x1xf32, #tpu.memory_space<vmem>>, vector<3x1xf32>
    %42 = vector.broadcast %41 : vector<3x1xf32> to vector<3x512xf32>
    %43 = arith.addf %40, %42 : vector<3x512xf32>
    %44 = math.tanh %43 : vector<3x512xf32>
    %c3_40 = arith.constant 3 : index
    %c0_41 = arith.constant 0 : index
    %c0_42 = arith.constant 0 : index
    %45 = vector.load %arg3[%c3_40, %c0_41, %c0_42] : memref<4x3x512xf32, #tpu.memory_space<vmem>>, vector<1x3x512xf32>
    %46 = vector.shape_cast %45 : vector<1x3x512xf32> to vector<3x512xf32>
    %47 = vector.shape_cast %44 : vector<3x512xf32> to vector<1x3x512xf32>
    tpu.vector_store %arg3[%c3_40, %c0_41, %c0_42], %47 {strides = array<i32>} : memref<4x3x512xf32, #tpu.memory_space<vmem>>, vector<1x3x512xf32>,
    return
  }
}

</mosaic_0001>

<bundles_post_ra>
// kernel: ae_forward.5
= control target key start
LH: loop header
LB: loop body
LE: loop exit
PB: predicated region body
PF: predicated region fallthrough
CT: control target
= control target key end

     0   :  { %v298_v3 = vmov 0   ;;  %vm46_vm0 = vcmask 392192   ;;  %s370_s0 = inlined_call_operand.vmem [shape: bf16[4,48,128], index: 0, kind: input, shape index: {}]   ;;  %s371_s2 = inlined_call_operand.vmem [shape: f32[16,1], index: 2, kind: input, shape index: {}]   ;;  %s372_s1 = inlined_call_operand.vmem [shape: bf16[16,48], index: 1, kind: input, shape index: {}]   ;;  %s373_s3 = inlined_call_operand.vmem [shape: f32[16,128], index: 3, kind: output, shape index: {}]  }
   0x1   :  { %v286_v0 = vld [vmem:[%s370_s0 + $0x10] sm:$0xff]  ;;  %v289_v1 = vld [vmem:[%s370_s0 + $0x28] sm:$0xff]  ;;  %v292_v2 = vld [vmem:[%s370_s0 + $0x40] sm:$0xff]  ;;  %297 = vset.pattern.permute.xlu0 %v298_v3 }
   0x2   :  { %v295_v4 = vld [vmem:[%s370_s0 + $0x58] sm:$0xff]  ;;  %55 = vmatpush.bf16.msra.mxu0 %v286_v0  ;;  %94 = vmatpush.bf16.msra.mxu1 %v289_v1  ;;  %v285_v5 = vld [vmem:[%s370_s0 + $0x8] sm:$0xff]  ;;  %v288_v6 = vld [vmem:[%s370_s0 + $0x20] sm:$0xff] }
   0x3   :  { %135 = vmatpush.bf16.msra.mxu2 %v292_v2  ;;  %176 = vmatpush.bf16.msra.mxu3 %v295_v4  ;;  %v291_v7 = vld [vmem:[%s370_s0 + $0x38] sm:$0xff]  ;;  %v294_v8 = vld [vmem:[%s370_s0 + $0x50] sm:$0xff]  ;;  %v187_v9 = vld [vmem:[%s371_s2] sm:$0xff] }
   0x4   :  { %191 = vperm.xlu0 %297, %v187_v9   ;;  %v284_v10 = vld [vmem:[%s370_s0] sm:$0xff]  ;;  %v287_v11 = vld [vmem:[%s370_s0 + $0x18] sm:$0xff]  ;;  %v290_v12 = vld [vmem:[%s370_s0 + $0x30] sm:$0xff] }
   0x5   :  { %v293_v13 = vld [vmem:[%s370_s0 + $0x48] sm:$0xff]  ;;  %v283_v14 = vld [vmem:[%s372_s1] sm:$0xff] }
   0x6   :  { %56 = vmatpush.bf16.msra.mxu0 %v285_v5  ;;  %95 = vmatpush.bf16.msra.mxu1 %v288_v6  ;;  %v188_v15 = vld [vmem:[%s371_s2 + $0x8] sm:$0xff] }
   0x7   :  { %136 = vmatpush.bf16.msra.mxu2 %v291_v7  ;;  %177 = vmatpush.bf16.msra.mxu3 %v294_v8 }
   0xa   :  { %57 = vmatpush.bf16.msra.mxu0 %v284_v10  ;;  %96 = vmatpush.bf16.msra.mxu1 %v287_v11 }
   0xb   :  { %137 = vmatpush.bf16.msra.mxu2 %v290_v12  ;;  %178 = vmatpush.bf16.msra.mxu3 %v293_v13 }
   0xc   :  { %196 = vperm.xlu0 %297, %v188_v15  }
   0xd   :  { %225 = vmatmul.msk.bf16.vlgmr.msra.gmra.mxu0 %vm46_vm0, %v283_v14  ;;  %244 = vmatmul.msk.bf16.vlgmr.msra.gmra.mxu1 %vm46_vm0, %v283_v14 }
   0xe   :  { %263 = vmatmul.msk.bf16.vlgmr.msra.gmra.mxu2 %vm46_vm0, %v283_v14  ;;  %282 = vmatmul.msk.bf16.vlgmr.msra.gmra.mxu3 %vm46_vm0, %v283_v14 }
  0x76   :  { %v192_v22 = vpop.permute.xlu0 %191 }
  0x7e   :  { %v197_v33 = vpop.permute.xlu0 %196 }
  0x8a   :  { %v59_v16 = vpop.f32.mrf.mxu0  ;;  %v98_v17 = vpop.f32.mrf.mxu1 }
  0x8b   :  { %v103_v18 = vmax.f32 %v59_v16, %v98_v17 }
  0x91   :  { %v139_v19 = vpop.f32.mrf.mxu2  ;;  %v180_v20 = vpop.f32.mrf.mxu3 }
  0x92   :  { %v144_v21 = vmax.f32 %v103_v18, %v139_v19  ;;  %v61_v24 = vpop.f32.mrf.mxu0  ;;  %v100_v25 = vpop.f32.mrf.mxu1 }
  0x93   :  { %v104_v28 = vmax.f32 %v61_v24, %v100_v25 }
  0x94   :  { %v185_v23 = vmax.f32 %v144_v21, %v180_v20 }
  0x96   :  { %v199_v26 = vadd.f32 %v192_v22, %v185_v23 }
  0x98   :  { %v201_v27 = vmax.f32 %v199_v26, 0.0 }
  0x99   :  { %v141_v29 = vpop.f32.mrf.mxu2  ;;  %v182_v31 = vpop.f32.mrf.mxu3 }
  0x9a   :  { %203 = vst [vmem:[%s373_s3] sm:$0xff] %v201_v27  ;;  %v145_v30 = vmax.f32 %v104_v28, %v141_v29 }
  0x9c   :  { %v186_v32 = vmax.f32 %v145_v30, %v182_v31 }
  0x9e   :  { %v200_v34 = vadd.f32 %v197_v33, %v186_v32 }
  0xa0   :  { %v202_v35 = vmax.f32 %v200_v34, 0.0 }
  0xa2   :  { %204 = vst [vmem:[%s373_s3 + $0x8] sm:$0xff] %v202_v35 }

// kernel: ae_forward.6
= control target key start
LH: loop header
LB: loop body
LE: loop exit
PB: predicated region body
PF: predicated region fallthrough
CT: control target
= control target key end

     0   :  { %v1076_v50 = vmov 0   ;;  %vm652_vm0 = vcmask 146432   ;;  %s1310_s0 = inlined_call_operand.vmem [shape: bf16[4,256,18], index: 0, kind: input, shape index: {}]   ;;  %s1311_s1 = inlined_call_operand.vmem [shape: bf16[8,256], index: 1, kind: input, shape index: {}]   ;;  %s1312_s2 = inlined_call_operand.vmem [shape: f32[8,1], index: 2, kind: input, shape index: {}]   ;;  %s1313_s3 = inlined_call_operand.vmem [shape: f32[8,18], index: 3, kind: output, shape index: {}]  }
   0x1   :  { %v1017_v0 = vld [vmem:[%s1310_s0 + $0x38] sm:$0xff]  ;;  %v1016_v4 = vld [vmem:[%s1310_s0 + $0x30] sm:$0xff]  ;;  %v1015_v8 = vld [vmem:[%s1310_s0 + $0x28] sm:$0xff]  ;;  %1075 = vset.pattern.permute.xlu0 %v1076_v50 }
   0x2   :  { %v1025_v1 = vld [vmem:[%s1310_s0 + $0x78] sm:$0xff]  ;;  %150 = vmatpush.bf16.msra.mxu0 %v1017_v0  ;;  %v1024_v5 = vld [vmem:[%s1310_s0 + $0x70] sm:$0xff]  ;;  %v1023_v9 = vld [vmem:[%s1310_s0 + $0x68] sm:$0xff] }
   0x3   :  { %v1033_v2 = vld [vmem:[%s1310_s0 + $0xb8] sm:$0xff]  ;;  %163 = vmatpush.bf16.msra.mxu1 %v1025_v1  ;;  %v1032_v6 = vld [vmem:[%s1310_s0 + $0xb0] sm:$0xff]  ;;  %v1031_v10 = vld [vmem:[%s1310_s0 + $0xa8] sm:$0xff] }
   0x4   :  { %v1041_v3 = vld [vmem:[%s1310_s0 + $0xf8] sm:$0xff]  ;;  %305 = vmatpush.bf16.msra.mxu2 %v1033_v2  ;;  %v1040_v7 = vld [vmem:[%s1310_s0 + $0xf0] sm:$0xff]  ;;  %v1039_v11 = vld [vmem:[%s1310_s0 + $0xe8] sm:$0xff] }
   0x5   :  { %318 = vmatpush.bf16.msra.mxu3 %v1041_v3  ;;  %v1014_v12 = vld [vmem:[%s1310_s0 + $0x20] sm:$0xff]  ;;  %v1013_v16 = vld [vmem:[%s1310_s0 + $0x18] sm:$0xff]  ;;  %v1012_v20 = vld [vmem:[%s1310_s0 + $0x10] sm:$0xff] }
   0x6   :  { %151 = vmatpush.bf16.msra.mxu0 %v1016_v4  ;;  %v1022_v13 = vld [vmem:[%s1310_s0 + $0x60] sm:$0xff]  ;;  %v1021_v17 = vld [vmem:[%s1310_s0 + $0x58] sm:$0xff]  ;;  %v1020_v21 = vld [vmem:[%s1310_s0 + $0x50] sm:$0xff] }
   0x7   :  { %164 = vmatpush.bf16.msra.mxu1 %v1024_v5  ;;  %v1030_v14 = vld [vmem:[%s1310_s0 + $0xa0] sm:$0xff]  ;;  %v1029_v18 = vld [vmem:[%s1310_s0 + $0x98] sm:$0xff]  ;;  %v1028_v22 = vld [vmem:[%s1310_s0 + $0x90] sm:$0xff] }
   0x8   :  { %306 = vmatpush.bf16.msra.mxu2 %v1032_v6  ;;  %v1038_v15 = vld [vmem:[%s1310_s0 + $0xe0] sm:$0xff]  ;;  %v1037_v19 = vld [vmem:[%s1310_s0 + $0xd8] sm:$0xff]  ;;  %v1036_v23 = vld [vmem:[%s1310_s0 + $0xd0] sm:$0xff] }
   0x9   :  { %319 = vmatpush.bf16.msra.mxu3 %v1040_v7  ;;  %v1011_v24 = vld [vmem:[%s1310_s0 + $0x8] sm:$0xff]  ;;  %v14_v28 = vld [vmem:[%s1311_s1] sm:$0xff]  ;;  %v1049_v35 = vld [vmem:[%s1310_s0 + $0x138] sm:$0xff] }
   0xa   :  { %152 = vmatpush.bf16.msra.mxu0 %v1015_v8  ;;  %v1019_v25 = vld [vmem:[%s1310_s0 + $0x48] sm:$0xff]  ;;  %v1010_v29 = vld [vmem:[%s1310_s0] sm:$0xff]  ;;  %v48_v31 = vunpack.c.l.b16 %v14_v28  ;;  %v49_v32 = vunpack.c.h.b16 %v14_v28  ;;  %v1057_v36 = vld [vmem:[%s1310_s0 + $0x178] sm:$0xff] }
   0xb   :  { %165 = vmatpush.bf16.msra.mxu1 %v1023_v9  ;;  %v1027_v26 = vld [vmem:[%s1310_s0 + $0x88] sm:$0xff]  ;;  %v1018_v30 = vld [vmem:[%s1310_s0 + $0x40] sm:$0xff]  ;;  %v1065_v37 = vld [vmem:[%s1310_s0 + $0x1b8] sm:$0xff] }
   0xc   :  { %307 = vmatpush.bf16.msra.mxu2 %v1031_v10  ;;  %v1035_v27 = vld [vmem:[%s1310_s0 + $0xc8] sm:$0xff]  ;;  %v1026_v33 = vld [vmem:[%s1310_s0 + $0x80] sm:$0xff]  ;;  %v1073_v38 = vld [vmem:[%s1310_s0 + $0x1f8] sm:$0xff]  ;;  %v1208_v39 = vpack.c.b16 %v48_v31, %v48_v31  ;;  %v1210_v40 = vpack.c.b16 %v49_v32, %v49_v32 }
   0xd   :  { %320 = vmatpush.bf16.msra.mxu3 %v1039_v11  ;;  %v1034_v34 = vld [vmem:[%s1310_s0 + $0xc0] sm:$0xff]  ;;  %v1048_v41 = vld [vmem:[%s1310_s0 + $0x130] sm:$0xff]  ;;  %v1047_v45 = vld [vmem:[%s1310_s0 + $0x128] sm:$0xff] }
   0xe   :  { %153 = vmatpush.bf16.msra.mxu0 %v1014_v12  ;;  %v1056_v42 = vld [vmem:[%s1310_s0 + $0x170] sm:$0xff]  ;;  %v1055_v46 = vld [vmem:[%s1310_s0 + $0x168] sm:$0xff]  ;;  %v644_v47 = vld [vmem:[%s1312_s2] sm:$0xff] }
   0xf   :  { %166 = vmatpush.bf16.msra.mxu1 %v1022_v13  ;;  %v1064_v43 = vld [vmem:[%s1310_s0 + $0x1b0] sm:$0xff]  ;;  %v1063_v48 = vld [vmem:[%s1310_s0 + $0x1a8] sm:$0xff]  ;;  %647 = vperm.xlu0 %1075, %v644_v47   ;;  %v1046_v51 = vld [vmem:[%s1310_s0 + $0x120] sm:$0xff] }
  0x10   :  { %308 = vmatpush.bf16.msra.mxu2 %v1030_v14  ;;  %v1072_v44 = vld [vmem:[%s1310_s0 + $0x1f0] sm:$0xff]  ;;  %v1071_v49 = vld [vmem:[%s1310_s0 + $0x1e8] sm:$0xff]  ;;  %v1054_v52 = vld [vmem:[%s1310_s0 + $0x160] sm:$0xff] }
  0x11   :  { %321 = vmatpush.bf16.msra.mxu3 %v1038_v15  ;;  %v1062_v53 = vld [vmem:[%s1310_s0 + $0x1a0] sm:$0xff]  ;;  %v1045_v55 = vld [vmem:[%s1310_s0 + $0x118] sm:$0xff]  ;;  %v1044_v59 = vld [vmem:[%s1310_s0 + $0x110] sm:$0xff] }
  0x12   :  { %154 = vmatpush.bf16.msra.mxu0 %v1013_v16  ;;  %v1070_v54 = vld [vmem:[%s1310_s0 + $0x1e0] sm:$0xff]  ;;  %v1053_v56 = vld [vmem:[%s1310_s0 + $0x158] sm:$0xff]  ;;  %v1052_v60 = vld [vmem:[%s1310_s0 + $0x150] sm:$0xff] }
  0x13   :  { %167 = vmatpush.bf16.msra.mxu1 %v1021_v17  ;;  %v1061_v57 = vld [vmem:[%s1310_s0 + $0x198] sm:$0xff]  ;;  %v1060_v61 = vld [vmem:[%s1310_s0 + $0x190] sm:$0xff]  ;;  %v1043_v63 = vld [vmem:[%s1310_s0 + $0x108] sm:$0xff] }
  0x14   :  { %309 = vmatpush.bf16.msra.mxu2 %v1029_v18  ;;  %v1069_v58 = vld [vmem:[%s1310_s0 + $0x1d8] sm:$0xff]  ;;  %v1068_v62 = vld [vmem:[%s1310_s0 + $0x1d0] sm:$0xff]  ;;  %v1051_v0 = vld [vmem:[%s1310_s0 + $0x148] sm:$0xff] }
  0x15   :  { %322 = vmatpush.bf16.msra.mxu3 %v1037_v19  ;;  %v1059_v1 = vld [vmem:[%s1310_s0 + $0x188] sm:$0xff]  ;;  %v1042_v3 = vld [vmem:[%s1310_s0 + $0x100] sm:$0xff] }
  0x16   :  { %155 = vmatpush.bf16.msra.mxu0 %v1012_v20  ;;  %v1067_v2 = vld [vmem:[%s1310_s0 + $0x1c8] sm:$0xff]  ;;  %v1050_v4 = vld [vmem:[%s1310_s0 + $0x140] sm:$0xff] }
  0x17   :  { %168 = vmatpush.bf16.msra.mxu1 %v1020_v21  ;;  %v1058_v5 = vld [vmem:[%s1310_s0 + $0x180] sm:$0xff] }
  0x18   :  { %310 = vmatpush.bf16.msra.mxu2 %v1028_v22  ;;  %v1066_v6 = vld [vmem:[%s1310_s0 + $0x1c0] sm:$0xff] }
  0x19   :  { %323 = vmatpush.bf16.msra.mxu3 %v1036_v23 }
  0x1a   :  { %156 = vmatpush.bf16.msra.mxu0 %v1011_v24 }
  0x1b   :  { %169 = vmatpush.bf16.msra.mxu1 %v1019_v25 }
  0x1c   :  { %311 = vmatpush.bf16.msra.mxu2 %v1027_v26 }
  0x1d   :  { %324 = vmatpush.bf16.msra.mxu3 %v1035_v27 }
  0x1e   :  { %157 = vmatpush.bf16.msra.mxu0 %v1010_v29 }
  0x1f   :  { %170 = vmatpush.bf16.msra.mxu1 %v1018_v30 }
  0x20   :  { %312 = vmatpush.bf16.msra.mxu2 %v1026_v33 }
  0x21   :  { %325 = vmatpush.bf16.msra.mxu3 %v1034_v34  ;;  %158 = vmatmul.bf16.vlgmr.msra.gmra.mxu0 %v1208_v39 }
  0x22   :  { %461 = vmatpush.bf16.msrb.mxu0 %v1049_v35  ;;  %171 = vmatmul.bf16.vlgmr.msra.gmra.mxu1 %v1210_v40 }
  0x23   :  { %474 = vmatpush.bf16.msrb.mxu1 %v1057_v36  ;;  %313 = vmatmul.bf16.vlgmr.msra.gmra.mxu2 %v1208_v39 }
  0x24   :  { %617 = vmatpush.bf16.msrb.mxu2 %v1065_v37  ;;  %326 = vmatmul.bf16.vlgmr.msra.gmra.mxu3 %v1210_v40 }
  0x25   :  { %630 = vmatpush.bf16.msrb.mxu3 %v1073_v38 }
  0x26   :  { %462 = vmatpush.bf16.msrb.mxu0 %v1048_v41 }
  0x27   :  { %475 = vmatpush.bf16.msrb.mxu1 %v1056_v42 }
  0x28   :  { %618 = vmatpush.bf16.msrb.mxu2 %v1064_v43 }
  0x29   :  { %631 = vmatpush.bf16.msrb.mxu3 %v1072_v44 }
  0x2a   :  { %463 = vmatpush.bf16.msrb.mxu0 %v1047_v45 }
  0x2b   :  { %476 = vmatpush.bf16.msrb.mxu1 %v1055_v46 }
  0x2c   :  { %619 = vmatpush.bf16.msrb.mxu2 %v1063_v48 }
  0x2d   :  { %632 = vmatpush.bf16.msrb.mxu3 %v1071_v49 }
  0x2e   :  { %464 = vmatpush.bf16.msrb.mxu0 %v1046_v51 }
  0x2f   :  { %477 = vmatpush.bf16.msrb.mxu1 %v1054_v52 }
  0x30   :  { %620 = vmatpush.bf16.msrb.mxu2 %v1062_v53 }
  0x31   :  { %633 = vmatpush.bf16.msrb.mxu3 %v1070_v54 }
  0x32   :  { %465 = vmatpush.bf16.msrb.mxu0 %v1045_v55 }
  0x33   :  { %478 = vmatpush.bf16.msrb.mxu1 %v1053_v56 }
  0x34   :  { %621 = vmatpush.bf16.msrb.mxu2 %v1061_v57 }
  0x35   :  { %634 = vmatpush.bf16.msrb.mxu3 %v1069_v58 }
  0x36   :  { %466 = vmatpush.bf16.msrb.mxu0 %v1044_v59 }
  0x37   :  { %479 = vmatpush.bf16.msrb.mxu1 %v1052_v60 }
  0x38   :  { %622 = vmatpush.bf16.msrb.mxu2 %v1060_v61 }
  0x39   :  { %635 = vmatpush.bf16.msrb.mxu3 %v1068_v62 }
  0x3a   :  { %467 = vmatpush.bf16.msrb.mxu0 %v1043_v63 }
  0x3b   :  { %480 = vmatpush.bf16.msrb.mxu1 %v1051_v0 }
  0x3c   :  { %623 = vmatpush.bf16.msrb.mxu2 %v1059_v1 }
  0x3d   :  { %636 = vmatpush.bf16.msrb.mxu3 %v1067_v2 }
  0x3e   :  { %468 = vmatpush.bf16.msrb.mxu0 %v1042_v3 }
  0x3f   :  { %481 = vmatpush.bf16.msrb.mxu1 %v1050_v4 }
  0x40   :  { %624 = vmatpush.bf16.msrb.mxu2 %v1058_v5 }
  0x41   :  { %637 = vmatpush.bf16.msrb.mxu3 %v1066_v6  ;;  %469 = vmatmul.bf16.vlgmr.msrb.gmra.mxu0 %v1208_v39 }
  0x42   :  { %482 = vmatmul.bf16.vlgmr.msrb.gmra.mxu1 %v1210_v40 }
  0x43   :  { %625 = vmatmul.bf16.vlgmr.msrb.gmra.mxu2 %v1208_v39 }
  0x44   :  { %638 = vmatmul.bf16.vlgmr.msrb.gmra.mxu3 %v1210_v40 }
  0x81   :  { %v648_v27 = vpop.permute.xlu0 %647 }
  0x9e   :  { %v159_v7 = vpop.f32.mrf.mxu0 }
  0x9f   :  { %v172_v8 = vpop.f32.mrf.mxu1 }
  0xa0   :  { %v173_v17 = vadd.f32 %v172_v8, %v159_v7 }
  0xa6   :  { %v314_v9 = vpop.f32.mrf.mxu2  ;;  %v161_v11 = vpop.f32.mrf.mxu0 }
  0xa7   :  { %v327_v10 = vpop.f32.mrf.mxu3  ;;  %v174_v12 = vpop.f32.mrf.mxu1 }
  0xa8   :  { %v328_v18 = vadd.f32 %v327_v10, %v314_v9 }
  0xaa   :  { %v331_v20 = vmax.f32 %v173_v17, %v328_v18 }
  0xae   :  { %v316_v13 = vpop.f32.mrf.mxu2 }
  0xaf   :  { %v329_v14 = vpop.f32.mrf.mxu3 }
  0xbe   :  { %v470_v15 = vpop.f32.mrf.mxu0 }
  0xbf   :  { %v483_v16 = vpop.f32.mrf.mxu1 }
  0xc0   :  { %v484_v19 = vadd.f32 %v483_v16, %v470_v15 }
  0xc2   :  { %v487_v23 = vmax.f32 %v331_v20, %v484_v19 }
  0xc6   :  { %v626_v21 = vpop.f32.mrf.mxu2  ;;  %v472_v25 = vpop.f32.mrf.mxu0 }
  0xc7   :  { %v639_v22 = vpop.f32.mrf.mxu3  ;;  %v485_v26 = vpop.f32.mrf.mxu1 }
  0xc8   :  { %v640_v24 = vadd.f32 %v639_v22, %v626_v21 }
  0xca   :  { %v643_v28 = vmax.f32 %v487_v23, %v640_v24 }
  0xcc   :  { %v650_v29 = vadd.f32 %v648_v27, %v643_v28 }
  0xce   :  { %v651_v30 = vmax.f32 %v650_v29, 0.0  ;;  %v628_v31 = vpop.f32.mrf.mxu2 }
  0xcf   :  { %v641_v32 = vpop.f32.mrf.mxu3 }
  0xd0   :  { %653 = vst.msk [vmem:[%s1313_s3] sm:$0xff] %vm652_vm0, %v651_v30 }

// kernel: ae_forward.7
= control target key start
LH: loop header
LB: loop body
LE: loop exit
PB: predicated region body
PF: predicated region fallthrough
CT: control target
= control target key end

     0   :  { %v345_v0 = vmov 0   ;;  %vm50_vm0 = vcmask 261120   ;;  %s444_s2 = inlined_call_operand.vmem [shape: f32[16,1], index: 2, kind: input, shape index: {}]   ;;  %s445_s0 = inlined_call_operand.vmem [shape: bf16[4,32,32], index: 0, kind: input, shape index: {}]   ;;  %s446_s1 = inlined_call_operand.vmem [shape: bf16[4,16,32], index: 1, kind: input, shape index: {}]   ;;  %s447_s3 = inlined_call_operand.vmem [shape: f32[4,16,32], index: 3, kind: output, shape index: {}]  }
   0x1   :  { %343 = vset.pattern.permute.xlu1 %v345_v0  ;;  %342 = vset.pattern.permute.xlu0 %v345_v0  ;;  %v80_v1 = vld [vmem:[%s444_s2] sm:$0xff]  ;;  %v331_v2 = vld [vmem:[%s445_s0 + $0x8] sm:$0xff]  ;;  %v334_v3 = vld [vmem:[%s445_s0 + $0x18] sm:$0xff] }
   0x2   :  { %84 = vperm.xlu1 %343, %v80_v1   ;;  %25 = vperm.xlu0 %342, %v80_v1   ;;  %v337_v4 = vld [vmem:[%s445_s0 + $0x28] sm:$0xff]  ;;  %v340_v5 = vld [vmem:[%s445_s0 + $0x38] sm:$0xff]  ;;  %v330_v6 = vld [vmem:[%s445_s0] sm:$0xff] }
   0x3   :  { %60 = vmatpush.bf16.msra.mxu0 %v331_v2  ;;  %118 = vmatpush.bf16.msra.mxu1 %v334_v3  ;;  %v333_v7 = vld [vmem:[%s445_s0 + $0x10] sm:$0xff]  ;;  %v336_v8 = vld [vmem:[%s445_s0 + $0x20] sm:$0xff]  ;;  %v332_v11 = vld [vmem:[%s446_s1 + $0x8] sm:$0xff] }
   0x4   :  { %177 = vmatpush.bf16.msra.mxu2 %v337_v4  ;;  %236 = vmatpush.bf16.msra.mxu3 %v340_v5  ;;  %v339_v9 = vld [vmem:[%s445_s0 + $0x30] sm:$0xff]  ;;  %v329_v10 = vld [vmem:[%s446_s1] sm:$0xff]  ;;  %v338_v13 = vld [vmem:[%s446_s1 + $0x18] sm:$0xff] }
   0x5   :  { %344 = vset.pattern.permute.xlu2 %v345_v0  ;;  %v335_v12 = vld [vmem:[%s446_s1 + $0x10] sm:$0xff]  ;;  %v81_v14 = vld [vmem:[%s444_s2 + $0x8] sm:$0xff] }
   0x6   :  { %143 = vperm.xlu2 %344, %v80_v1  }
   0x7   :  { %61 = vmatpush.bf16.msra.mxu0 %v330_v6  ;;  %119 = vmatpush.bf16.msra.mxu1 %v333_v7 }
   0x8   :  { %178 = vmatpush.bf16.msra.mxu2 %v336_v8  ;;  %237 = vmatpush.bf16.msra.mxu3 %v339_v9 }
   0xa   :  { %265 = vmatmul.msk.bf16.vlgmr.msra.gmra.mxu0 %vm50_vm0, %v329_v10  ;;  %284 = vmatmul.msk.bf16.vlgmr.msra.gmra.mxu1 %vm50_vm0, %v332_v11 }
   0xb   :  { %305 = vmatmul.msk.bf16.vlgmr.msra.gmra.mxu2 %vm50_vm0, %v335_v12  ;;  %326 = vmatmul.msk.bf16.vlgmr.msra.gmra.mxu3 %vm50_vm0, %v338_v13 }
   0xc   :  { %89 = vperm.xlu1 %343, %v81_v14   ;;  %30 = vperm.xlu0 %342, %v81_v14  }
   0xe   :  { %148 = vperm.xlu2 %344, %v81_v14  }
  0x14   :  { %207 = vperm.xlu1 %343, %v81_v14   ;;  %202 = vperm.xlu0 %342, %v80_v1  }
  0x60   :  { %v144_v25 = vpop.permute.xlu2 %143 }
  0x68   :  { %v149_v40 = vpop.permute.xlu2 %148 }
  0x74   :  { %v26_v15 = vpop.permute.xlu0 %25  ;;  %v85_v16 = vpop.permute.xlu1 %84 }
  0x7e   :  { %v31_v17 = vpop.permute.xlu0 %30  ;;  %v90_v24 = vpop.permute.xlu1 %89 }
  0x86   :  { %v203_v26 = vpop.permute.xlu0 %202  ;;  %v208_v39 = vpop.permute.xlu1 %207 }
  0x87   :  { %v63_v18 = vpop.f32.mrf.mxu0  ;;  %v121_v19 = vpop.f32.mrf.mxu1 }
  0x88   :  { %v64_v20 = vadd.f32 %v63_v18, %v26_v15  ;;  %v122_v21 = vadd.f32 %v121_v19, %v85_v16 }
  0x8a   :  { %v68_v22 = vmax.f32 %v64_v20, 0.0  ;;  %v126_v23 = vmax.f32 %v122_v21, 0.0 }
  0x8c   :  { %70 = vst.msk [vmem:[%s447_s3] sm:$0xff] %vm50_vm0, %v68_v22 }
  0x8d   :  { %285 = vst.msk [vmem:[%s447_s3 + $0x10] sm:$0xff] %vm50_vm0, %v126_v23 }
  0x8e   :  { %v180_v27 = vpop.f32.mrf.mxu2  ;;  %v239_v28 = vpop.f32.mrf.mxu3 }
  0x8f   :  { %v181_v29 = vadd.f32 %v180_v27, %v144_v25  ;;  %v240_v30 = vadd.f32 %v239_v28, %v203_v26  ;;  %v65_v31 = vpop.f32.mrf.mxu0  ;;  %v123_v32 = vpop.f32.mrf.mxu1 }
  0x90   :  { %v66_v33 = vadd.f32 %v65_v31, %v31_v17  ;;  %v124_v34 = vadd.f32 %v123_v32, %v90_v24 }
  0x91   :  { %v185_v35 = vmax.f32 %v181_v29, 0.0  ;;  %v244_v36 = vmax.f32 %v240_v30, 0.0 }
  0x92   :  { %v69_v37 = vmax.f32 %v66_v33, 0.0  ;;  %v127_v38 = vmax.f32 %v124_v34, 0.0 }
  0x93   :  { %306 = vst.msk [vmem:[%s447_s3 + $0x20] sm:$0xff] %vm50_vm0, %v185_v35 }
  0x94   :  { %327 = vst.msk [vmem:[%s447_s3 + $0x30] sm:$0xff] %vm50_vm0, %v244_v36 }
  0x95   :  { %71 = vst.msk [vmem:[%s447_s3 + $0x8] sm:$0xff] %vm50_vm0, %v69_v37 }
  0x96   :  { %286 = vst.msk [vmem:[%s447_s3 + $0x18] sm:$0xff] %vm50_vm0, %v127_v38  ;;  %v182_v41 = vpop.f32.mrf.mxu2  ;;  %v241_v42 = vpop.f32.mrf.mxu3 }
  0x97   :  { %v183_v43 = vadd.f32 %v182_v41, %v149_v40  ;;  %v242_v44 = vadd.f32 %v241_v42, %v208_v39 }
  0x99   :  { %v186_v45 = vmax.f32 %v183_v43, 0.0  ;;  %v245_v46 = vmax.f32 %v242_v44, 0.0 }
  0x9b   :  { %307 = vst.msk [vmem:[%s447_s3 + $0x28] sm:$0xff] %vm50_vm0, %v186_v45 }
  0x9c   :  { %328 = vst.msk [vmem:[%s447_s3 + $0x38] sm:$0xff] %vm50_vm0, %v245_v46 }

// kernel: ae_forward.8
= control target key start
LH: loop header
LB: loop body
LE: loop exit
PB: predicated region body
PF: predicated region fallthrough
CT: control target
= control target key end

     0   :  { %v374_v3 = vmov 0   ;;  %vm54_vm0 = vcmask 523264   ;;  %s470_s0 = inlined_call_operand.vmem [shape: bf16[4,64,128], index: 0, kind: input, shape index: {}]   ;;  %s471_s2 = inlined_call_operand.vmem [shape: f32[8,1], index: 2, kind: input, shape index: {}]   ;;  %s472_s1 = inlined_call_operand.vmem [shape: bf16[4,8,64], index: 1, kind: input, shape index: {}]   ;;  %s473_s3 = inlined_call_operand.vmem [shape: f32[4,8,128], index: 3, kind: output, shape index: {}]  }
   0x1   :  { %v358_v0 = vld [vmem:[%s470_s0 + $0x18] sm:$0xff]  ;;  %373 = vset.pattern.permute.xlu1 %v374_v3  ;;  %372 = vset.pattern.permute.xlu0 %v374_v3  ;;  %v357_v5 = vld [vmem:[%s470_s0 + $0x10] sm:$0xff]  ;;  %v356_v9 = vld [vmem:[%s470_s0 + $0x8] sm:$0xff] }
   0x2   :  { %v362_v1 = vld [vmem:[%s470_s0 + $0x38] sm:$0xff]  ;;  %62 = vmatpush.bf16.msra.mxu0 %v358_v0  ;;  %v361_v6 = vld [vmem:[%s470_s0 + $0x30] sm:$0xff]  ;;  %v360_v10 = vld [vmem:[%s470_s0 + $0x28] sm:$0xff] }
   0x3   :  { %v366_v2 = vld [vmem:[%s470_s0 + $0x58] sm:$0xff]  ;;  %121 = vmatpush.bf16.msra.mxu1 %v362_v1  ;;  %v365_v7 = vld [vmem:[%s470_s0 + $0x50] sm:$0xff]  ;;  %v144_v11 = vld [vmem:[%s471_s2] sm:$0xff] }
   0x4   :  { %v370_v4 = vld [vmem:[%s470_s0 + $0x78] sm:$0xff]  ;;  %181 = vmatpush.bf16.msra.mxu2 %v366_v2  ;;  %v369_v8 = vld [vmem:[%s470_s0 + $0x70] sm:$0xff]  ;;  %v364_v12 = vld [vmem:[%s470_s0 + $0x48] sm:$0xff]  ;;  %147 = vperm.xlu1 %373, %v144_v11  }
   0x5   :  { %241 = vmatpush.bf16.msra.mxu3 %v370_v4  ;;  %v368_v13 = vld [vmem:[%s470_s0 + $0x68] sm:$0xff]  ;;  %27 = vperm.xlu0 %372, %v144_v11   ;;  %v355_v14 = vld [vmem:[%s470_s0] sm:$0xff] }
   0x6   :  { %63 = vmatpush.bf16.msra.mxu0 %v357_v5  ;;  %v359_v15 = vld [vmem:[%s470_s0 + $0x20] sm:$0xff]  ;;  %v301_v20 = vld [vmem:[%s472_s1 + $0x8] sm:$0xf]  ;;  %v328_v21 = vld [vmem:[%s472_s1 + $0xc] sm:$0xf] }
   0x7   :  { %122 = vmatpush.bf16.msra.mxu1 %v361_v6  ;;  %v363_v16 = vld [vmem:[%s470_s0 + $0x40] sm:$0xff] }
   0x8   :  { %182 = vmatpush.bf16.msra.mxu2 %v365_v7  ;;  %v367_v17 = vld [vmem:[%s470_s0 + $0x60] sm:$0xff] }
   0x9   :  { %242 = vmatpush.bf16.msra.mxu3 %v369_v8  ;;  %v15_v18 = vld [vmem:[%s472_s1] sm:$0xf]  ;;  %v274_v19 = vld [vmem:[%s472_s1 + $0x4] sm:$0xf] }
   0xa   :  { %64 = vmatpush.bf16.msra.mxu0 %v356_v9 }
   0xb   :  { %123 = vmatpush.bf16.msra.mxu1 %v360_v10 }
   0xc   :  { %183 = vmatpush.bf16.msra.mxu2 %v364_v12  ;;  %207 = vperm.xlu1 %373, %v144_v11  }
   0xd   :  { %243 = vmatpush.bf16.msra.mxu3 %v368_v13  ;;  %87 = vperm.xlu0 %372, %v144_v11  }
   0xe   :  { %65 = vmatpush.bf16.msra.mxu0 %v355_v14 }
   0xf   :  { %124 = vmatpush.bf16.msra.mxu1 %v359_v15 }
  0x10   :  { %184 = vmatpush.bf16.msra.mxu2 %v363_v16 }
  0x11   :  { %244 = vmatpush.bf16.msra.mxu3 %v367_v17  ;;  %273 = vmatmul.msk.bf16.vlgmr.msra.gmra.mxu0 %vm54_vm0, %v15_v18 }
  0x12   :  { %299 = vmatmul.msk.bf16.vlgmr.msra.gmra.mxu1 %vm54_vm0, %v274_v19 }
  0x13   :  { %326 = vmatmul.msk.bf16.vlgmr.msra.gmra.mxu2 %vm54_vm0, %v301_v20 }
  0x14   :  { %353 = vmatmul.msk.bf16.vlgmr.msra.gmra.mxu3 %vm54_vm0, %v328_v21 }
  0x76   :  { %v148_v23 = vpop.permute.xlu1 %147 }
  0x77   :  { %v28_v22 = vpop.permute.xlu0 %27 }
  0x7e   :  { %v208_v31 = vpop.permute.xlu1 %207 }
  0x7f   :  { %v88_v24 = vpop.permute.xlu0 %87 }
  0x8e   :  { %v67_v25 = vpop.f32.mrf.mxu0 }
  0x8f   :  { %v126_v26 = vpop.f32.mrf.mxu1  ;;  %v68_v27 = vadd.f32 %v67_v25, %v28_v22 }
  0x90   :  { %v127_v28 = vadd.f32 %v126_v26, %v88_v24 }
  0x91   :  { %v71_v29 = vmax.f32 %v68_v27, 0.0 }
  0x92   :  { %v130_v30 = vmax.f32 %v127_v28, 0.0 }
  0x93   :  { %72 = vst [vmem:[%s473_s3] sm:$0xff] %v71_v29 }
  0x94   :  { %300 = vst [vmem:[%s473_s3 + $0x8] sm:$0xff] %v130_v30 }
  0x96   :  { %v186_v32 = vpop.f32.mrf.mxu2  ;;  %v69_v36 = vpop.f32.mrf.mxu0 }
  0x97   :  { %v246_v33 = vpop.f32.mrf.mxu3  ;;  %v187_v34 = vadd.f32 %v186_v32, %v148_v23  ;;  %v128_v37 = vpop.f32.mrf.mxu1 }
  0x98   :  { %v247_v35 = vadd.f32 %v246_v33, %v208_v31 }
  0x99   :  { %v190_v38 = vmax.f32 %v187_v34, 0.0 }
  0x9a   :  { %v250_v39 = vmax.f32 %v247_v35, 0.0 }
  0x9b   :  { %327 = vst [vmem:[%s473_s3 + $0x10] sm:$0xff] %v190_v38 }
  0x9c   :  { %354 = vst [vmem:[%s473_s3 + $0x18] sm:$0xff] %v250_v39 }
  0x9e   :  { %v188_v40 = vpop.f32.mrf.mxu2 }
  0x9f   :  { %v248_v41 = vpop.f32.mrf.mxu3 }

// kernel: ae_forward.9
= control target key start
LH: loop header
LB: loop body
LE: loop exit
PB: predicated region body
PF: predicated region fallthrough
CT: control target
= control target key end

     0   :  { %vm70_vm0 = vcmask 261120   ;;  %v778_v3 = vmov 0   ;;  %vm136_vm1 = vcmask 1043456   ;;  %s1063_s0 = inlined_call_operand.vmem [shape: bf16[4,32,512], index: 0, kind: input, shape index: {}]   ;;  %s1064_s1 = inlined_call_operand.vmem [shape: bf16[4,3,32], index: 1, kind: input, shape index: {}]   ;;  %s1065_s2 = inlined_call_operand.vmem [shape: f32[3,1], index: 2, kind: input, shape index: {}]   ;;  %s1066_s3 = inlined_call_operand.vmem [shape: f32[4,3,512], index: 3, kind: output, shape index: {}]  }
   0x1   :  { %v552_v0 = vld [vmem:[%s1063_s0 + $0x20] sm:$0xf]  ;;  %v717_v1 = vld [vmem:[%s1063_s0 + $0x2c] sm:$0xf0]  ;;  %v715_v2 = vld [vmem:[%s1063_s0 + $0x24] sm:$0xf]  ;;  %744 = vset.pattern.permute.xlu0 %v778_v3  ;;  %745 = vset.pattern.permute.xlu1 %v778_v3 }
   0x2   :  { %v553_v4 = vor.u32 %v717_v1, %v552_v0  ;;  %v554_v5 = vld [vmem:[%s1063_s0 + $0x30] sm:$0xf0]  ;;  %v560_v6 = vld [vmem:[%s1063_s0 + $0x28] sm:$0xf]  ;;  %v718_v7 = vld [vmem:[%s1063_s0 + $0x34] sm:$0xf0] }
   0x3   :  { %v557_v8 = vor.u32 %v715_v2, %v554_v5  ;;  %v561_v9 = vor.u32 %v718_v7, %v560_v6  ;;  %v716_v10 = vld [vmem:[%s1063_s0 + $0x2c] sm:$0xf]  ;;  %v562_v11 = vld [vmem:[%s1063_s0 + $0x38] sm:$0xf0]  ;;  %v536_v12 = vld [vmem:[%s1063_s0] sm:$0xf] }
   0x4   :  { %80 = vmatpush.bf16.msra.mxu0 %v553_v4  ;;  %v565_v13 = vor.u32 %v716_v10, %v562_v11  ;;  %v713_v14 = vld [vmem:[%s1063_s0 + $0xc] sm:$0xf0]  ;;  %v711_v15 = vld [vmem:[%s1063_s0 + $0x4] sm:$0xf]  ;;  %v538_v16 = vld [vmem:[%s1063_s0 + $0x10] sm:$0xf0] }
   0x5   :  { %93 = vmatpush.bf16.msra.mxu1 %v557_v8  ;;  %106 = vmatpush.bf16.msra.mxu2 %v561_v9  ;;  %v537_v17 = vor.u32 %v713_v14, %v536_v12  ;;  %v541_v18 = vor.u32 %v711_v15, %v538_v16  ;;  %v544_v19 = vld [vmem:[%s1063_s0 + $0x8] sm:$0xf]  ;;  %v714_v20 = vld [vmem:[%s1063_s0 + $0x14] sm:$0xf0]  ;;  %v712_v21 = vld [vmem:[%s1063_s0 + $0xc] sm:$0xf] }
   0x6   :  { %119 = vmatpush.bf16.msra.mxu3 %v565_v13  ;;  %v545_v22 = vor.u32 %v714_v20, %v544_v19  ;;  %v546_v23 = vld [vmem:[%s1063_s0 + $0x18] sm:$0xf0]  ;;  %v15_v24 = vld [vmem:[%s1064_s1] sm:$0x3]  ;;  %v724_v25 = vld [vmem:[%s1063_s0 + $0x6c] sm:$0xf] }
   0x7   :  { %v549_v26 = vor.u32 %v712_v21, %v546_v23  ;;  %v607_v27 = vld [vmem:[%s1063_s0 + $0x78] sm:$0xf0]  ;;  %v605_v28 = vld [vmem:[%s1063_s0 + $0x68] sm:$0xf]  ;;  %v726_v29 = vld [vmem:[%s1063_s0 + $0x74] sm:$0xf0] }
   0x8   :  { %81 = vmatpush.bf16.msra.mxu0 %v537_v17  ;;  %v610_v30 = vor.u32 %v724_v25, %v607_v27  ;;  %v606_v31 = vor.u32 %v726_v29, %v605_v28  ;;  %v723_v32 = vld [vmem:[%s1063_s0 + $0x64] sm:$0xf]  ;;  %v599_v33 = vld [vmem:[%s1063_s0 + $0x70] sm:$0xf0]  ;;  %v597_v34 = vld [vmem:[%s1063_s0 + $0x60] sm:$0xf] }
   0x9   :  { %94 = vmatpush.bf16.msra.mxu1 %v541_v18  ;;  %107 = vmatpush.bf16.msra.mxu2 %v545_v22  ;;  %v602_v35 = vor.u32 %v723_v32, %v599_v33  ;;  %v725_v36 = vld [vmem:[%s1063_s0 + $0x6c] sm:$0xf0]  ;;  %v720_v37 = vld [vmem:[%s1063_s0 + $0x4c] sm:$0xf]  ;;  %v591_v38 = vld [vmem:[%s1063_s0 + $0x58] sm:$0xf0] }
   0xa   :  { %120 = vmatpush.bf16.msra.mxu3 %v549_v26  ;;  %v598_v39 = vor.u32 %v725_v36, %v597_v34  ;;  %v589_v40 = vld [vmem:[%s1063_s0 + $0x48] sm:$0xf]  ;;  %v722_v41 = vld [vmem:[%s1063_s0 + $0x54] sm:$0xf0]  ;;  %v581_v42 = vld [vmem:[%s1063_s0 + $0x40] sm:$0xf]  ;;  %v594_v43 = vor.u32 %v720_v37, %v591_v38 }
   0xb   :  { %566 = vmatmul.msk.bf16.vlgmr.msra.gmra.mxu0 %vm70_vm0, %v15_v24  ;;  %v590_v44 = vor.u32 %v722_v41, %v589_v40  ;;  %v721_v45 = vld [vmem:[%s1063_s0 + $0x4c] sm:$0xf0]  ;;  %v719_v46 = vld [vmem:[%s1063_s0 + $0x44] sm:$0xf]  ;;  %v583_v47 = vld [vmem:[%s1063_s0 + $0x50] sm:$0xf0] }
   0xc   :  { %567 = vmatmul.msk.bf16.vlgmr.msra.gmra.mxu1 %vm70_vm0, %v15_v24  ;;  %568 = vmatmul.msk.bf16.vlgmr.msra.gmra.mxu2 %vm70_vm0, %v15_v24  ;;  %v732_v48 = vld [vmem:[%s1063_s0 + $0xac] sm:$0xf]  ;;  %v654_v49 = vld [vmem:[%s1063_s0 + $0xb8] sm:$0xf0]  ;;  %v586_v50 = vor.u32 %v719_v46, %v583_v47  ;;  %v24_v52 = vld [vmem:[%s1065_s2] sm:$0x7]  ;;  %v582_v55 = vor.u32 %v721_v45, %v581_v42 }
   0xd   :  { %235 = vmatpush.bf16.msrb.mxu2 %v606_v31  ;;  %569 = vmatmul.msk.bf16.vlgmr.msra.gmra.mxu3 %vm70_vm0, %v15_v24  ;;  %v657_v51 = vor.u32 %v732_v48, %v654_v49  ;;  %v652_v53 = vld [vmem:[%s1063_s0 + $0xa8] sm:$0xf]  ;;  %v734_v54 = vld [vmem:[%s1063_s0 + $0xb4] sm:$0xf0]  ;;  %v731_v57 = vld [vmem:[%s1063_s0 + $0xa4] sm:$0xf] }
   0xe   :  { %248 = vmatpush.bf16.msrb.mxu3 %v610_v30  ;;  %222 = vmatpush.bf16.msrb.mxu1 %v602_v35  ;;  %v653_v56 = vor.u32 %v734_v54, %v652_v53  ;;  %v646_v58 = vld [vmem:[%s1063_s0 + $0xb0] sm:$0xf0]  ;;  %v644_v59 = vld [vmem:[%s1063_s0 + $0xa0] sm:$0xf]  ;;  %v733_v61 = vld [vmem:[%s1063_s0 + $0xac] sm:$0xf0] }
   0xf   :  { %209 = vmatpush.bf16.msrb.mxu0 %v598_v39  ;;  %27 = vperm.xlu0 %744, %v24_v52   ;;  %v649_v60 = vor.u32 %v731_v57, %v646_v58  ;;  %v728_v62 = vld [vmem:[%s1063_s0 + $0x8c] sm:$0xf]  ;;  %v638_v63 = vld [vmem:[%s1063_s0 + $0x98] sm:$0xf0]  ;;  %v645_v0 = vor.u32 %v733_v61, %v644_v59  ;;  %v636_v2 = vld [vmem:[%s1063_s0 + $0x88] sm:$0xf] }
  0x10   :  { %v641_v1 = vor.u32 %v728_v62, %v638_v63  ;;  %v730_v3 = vld [vmem:[%s1063_s0 + $0x94] sm:$0xf0]  ;;  %v628_v4 = vld [vmem:[%s1063_s0 + $0x80] sm:$0xf]  ;;  %v729_v6 = vld [vmem:[%s1063_s0 + $0x8c] sm:$0xf0] }
  0x11   :  { %236 = vmatpush.bf16.msrb.mxu2 %v590_v44  ;;  %v637_v5 = vor.u32 %v730_v3, %v636_v2  ;;  %v727_v7 = vld [vmem:[%s1063_s0 + $0x84] sm:$0xf]  ;;  %v630_v8 = vld [vmem:[%s1063_s0 + $0x90] sm:$0xf0]  ;;  %v629_v10 = vor.u32 %v729_v6, %v628_v4  ;;  %v154_v11 = vld [vmem:[%s1065_s2] sm:$0x7] }
  0x12   :  { %249 = vmatpush.bf16.msrb.mxu3 %v594_v43  ;;  %223 = vmatpush.bf16.msrb.mxu1 %v586_v50  ;;  %v633_v9 = vor.u32 %v727_v7, %v630_v8  ;;  %v740_v12 = vld [vmem:[%s1063_s0 + $0xec] sm:$0xf]  ;;  %v699_v13 = vld [vmem:[%s1063_s0 + $0xe8] sm:$0xf]  ;;  %v742_v14 = vld [vmem:[%s1063_s0 + $0xf4] sm:$0xf0] }
  0x13   :  { %210 = vmatpush.bf16.msrb.mxu0 %v582_v55  ;;  %v701_v15 = vld [vmem:[%s1063_s0 + $0xf8] sm:$0xf0]  ;;  %v739_v16 = vld [vmem:[%s1063_s0 + $0xe4] sm:$0xf]  ;;  %v693_v17 = vld [vmem:[%s1063_s0 + $0xf0] sm:$0xf0]  ;;  %v700_v21 = vor.u32 %v742_v14, %v699_v13 }
  0x14   :  { %v570_v18 = vld [vmem:[%s1064_s1 + $0x2] sm:$0x3]  ;;  %v741_v20 = vld [vmem:[%s1063_s0 + $0xec] sm:$0xf0]  ;;  %v704_v22 = vor.u32 %v740_v12, %v701_v15  ;;  %v696_v23 = vor.u32 %v739_v16, %v693_v17  ;;  %v736_v24 = vld [vmem:[%s1063_s0 + $0xcc] sm:$0xf] }
  0x15   :  { %364 = vmatpush.bf16.msra.mxu2 %v653_v56  ;;  %v691_v19 = vld [vmem:[%s1063_s0 + $0xe0] sm:$0xf]  ;;  %v683_v25 = vld [vmem:[%s1063_s0 + $0xc8] sm:$0xf]  ;;  %v738_v26 = vld [vmem:[%s1063_s0 + $0xd4] sm:$0xf0] }
  0x16   :  { %377 = vmatpush.bf16.msra.mxu3 %v657_v51  ;;  %351 = vmatpush.bf16.msra.mxu1 %v649_v60  ;;  %v692_v27 = vor.u32 %v741_v20, %v691_v19  ;;  %v685_v28 = vld [vmem:[%s1063_s0 + $0xd8] sm:$0xf0]  ;;  %v735_v29 = vld [vmem:[%s1063_s0 + $0xc4] sm:$0xf]  ;;  %v677_v30 = vld [vmem:[%s1063_s0 + $0xd0] sm:$0xf0]  ;;  %v684_v33 = vor.u32 %v738_v26, %v683_v25 }
  0x17   :  { %338 = vmatpush.bf16.msra.mxu0 %v645_v0  ;;  %157 = vperm.xlu0 %744, %v154_v11   ;;  %v675_v31 = vld [vmem:[%s1063_s0 + $0xc0] sm:$0xf]  ;;  %v737_v32 = vld [vmem:[%s1063_s0 + $0xcc] sm:$0xf0]  ;;  %v688_v35 = vor.u32 %v736_v24, %v685_v28  ;;  %v680_v36 = vor.u32 %v735_v29, %v677_v30  ;;  %v617_v39 = vld [vmem:[%s1064_s1 + $0x4] sm:$0x3] }
  0x18   :  { %v283_v34 = vld [vmem:[%s1065_s2] sm:$0x7]  ;;  %v676_v37 = vor.u32 %v737_v32, %v675_v31  ;;  %v664_v40 = vld [vmem:[%s1064_s1 + $0x6] sm:$0x3] }
  0x19   :  { %365 = vmatpush.bf16.msra.mxu2 %v637_v5  ;;  %286 = vperm.xlu1 %745, %v283_v34   ;;  %v412_v38 = vld [vmem:[%s1065_s2] sm:$0x7] }
  0x1a   :  { %378 = vmatpush.bf16.msra.mxu3 %v641_v1  ;;  %352 = vmatpush.bf16.msra.mxu1 %v633_v9 }
  0x1b   :  { %339 = vmatpush.bf16.msra.mxu0 %v629_v10 }
  0x1c   :  { %611 = vmatmul.msk.bf16.vlgmr.msrb.gmra.mxu0 %vm70_vm0, %v570_v18  ;;  %612 = vmatmul.msk.bf16.vlgmr.msrb.gmra.mxu1 %vm70_vm0, %v570_v18 }
  0x1d   :  { %613 = vmatmul.msk.bf16.vlgmr.msrb.gmra.mxu2 %vm70_vm0, %v570_v18  ;;  %614 = vmatmul.msk.bf16.vlgmr.msrb.gmra.mxu3 %vm70_vm0, %v570_v18 }
  0x1e   :  { %493 = vmatpush.bf16.msrb.mxu2 %v700_v21  ;;  %506 = vmatpush.bf16.msrb.mxu3 %v704_v22 }
  0x1f   :  { %480 = vmatpush.bf16.msrb.mxu1 %v696_v23  ;;  %467 = vmatpush.bf16.msrb.mxu0 %v692_v27 }
  0x21   :  { %415 = vperm.xlu1 %745, %v412_v38  }
  0x22   :  { %494 = vmatpush.bf16.msrb.mxu2 %v684_v33  ;;  %507 = vmatpush.bf16.msrb.mxu3 %v688_v35 }
  0x23   :  { %481 = vmatpush.bf16.msrb.mxu1 %v680_v36  ;;  %468 = vmatpush.bf16.msrb.mxu0 %v676_v37 }
  0x2c   :  { %658 = vmatmul.msk.bf16.vlgmr.msra.gmra.mxu0 %vm70_vm0, %v617_v39  ;;  %659 = vmatmul.msk.bf16.vlgmr.msra.gmra.mxu1 %vm70_vm0, %v617_v39 }
  0x2d   :  { %660 = vmatmul.msk.bf16.vlgmr.msra.gmra.mxu2 %vm70_vm0, %v617_v39  ;;  %661 = vmatmul.msk.bf16.vlgmr.msra.gmra.mxu3 %vm70_vm0, %v617_v39 }
  0x3c   :  { %705 = vmatmul.msk.bf16.vlgmr.msrb.gmra.mxu0 %vm70_vm0, %v664_v40  ;;  %706 = vmatmul.msk.bf16.vlgmr.msrb.gmra.mxu1 %vm70_vm0, %v664_v40 }
  0x3d   :  { %707 = vmatmul.msk.bf16.vlgmr.msrb.gmra.mxu2 %vm70_vm0, %v664_v40  ;;  %708 = vmatmul.msk.bf16.vlgmr.msrb.gmra.mxu3 %vm70_vm0, %v664_v40 }
  0x81   :  { %v28_v41 = vpop.permute.xlu0 %27 }
  0x88   :  { %v83_v42 = vpop.f32.mrf.mxu0 }
  0x89   :  { %v96_v43 = vpop.f32.mrf.mxu1  ;;  %v84_v44 = vadd.f32 %v83_v42, %v28_v41  ;;  %v158_v57 = vpop.permute.xlu0 %157 }
  0x8a   :  { %v97_v45 = vadd.f32 %v96_v43, %v28_v41 }
  0x8b   :  { %746 = vtanh.f32 %v84_v44  ;;  %v287_v14 = vpop.permute.xlu1 %286 }
  0x8c   :  { %748 = vtanh.f32 %v97_v45 }
  0x8f   :  { %v109_v46 = vpop.f32.mrf.mxu2 }
  0x90   :  { %v110_v47 = vadd.f32 %v109_v46, %v28_v41  ;;  %v122_v48 = vpop.f32.mrf.mxu3  ;;  %v85_v49 = vpop.f32.mrf.mxu0 }
  0x91   :  { %v747_v50 = vpop.eup %746  ;;  %v123_v51 = vadd.f32 %v122_v48, %v28_v41  ;;  %v98_v52 = vpop.f32.mrf.mxu1 }
  0x92   :  { %v749_v53 = vpop.eup %748  ;;  %750 = vtanh.f32 %v110_v47 }
  0x93   :  { %v134_v54 = vrot.slane %v749_v53, 4  ;;  %752 = vtanh.f32 %v123_v51  ;;  %v416_v39 = vpop.permute.xlu1 %415 }
  0x95   :  { %v137_v55 = vsel %vm136_vm1, %v747_v50, %v134_v54 }
  0x96   :  { %141 = vst [vmem:[%s1066_s3] sm:$0x77] %v137_v55 }
  0x97   :  { %v111_v56 = vpop.f32.mrf.mxu2 }
  0x98   :  { %v751_v58 = vpop.eup %750  ;;  %v124_v59 = vpop.f32.mrf.mxu3 }
  0x99   :  { %v212_v60 = vpop.f32.mrf.mxu0  ;;  %v753_v61 = vpop.eup %752 }
  0x9a   :  { %v225_v62 = vpop.f32.mrf.mxu1  ;;  %v213_v63 = vadd.f32 %v212_v60, %v158_v57  ;;  %v135_v0 = vrot.slane %v753_v61, 4 }
  0x9b   :  { %v226_v1 = vadd.f32 %v225_v62, %v158_v57 }
  0x9c   :  { %754 = vtanh.f32 %v213_v63  ;;  %v138_v2 = vsel %vm136_vm1, %v751_v58, %v135_v0 }
  0x9d   :  { %756 = vtanh.f32 %v226_v1  ;;  %142 = vst [vmem:[%s1066_s3 + $0x8] sm:$0x77] %v138_v2 }
  0xa0   :  { %v238_v3 = vpop.f32.mrf.mxu2  ;;  %v251_v5 = vpop.f32.mrf.mxu3 }
  0xa1   :  { %v239_v4 = vadd.f32 %v238_v3, %v158_v57  ;;  %v214_v6 = vpop.f32.mrf.mxu0  ;;  %v252_v8 = vadd.f32 %v251_v5, %v158_v57 }
  0xa2   :  { %v755_v7 = vpop.eup %754  ;;  %v227_v9 = vpop.f32.mrf.mxu1 }
  0xa3   :  { %v757_v10 = vpop.eup %756  ;;  %758 = vtanh.f32 %v239_v4 }
  0xa4   :  { %v263_v11 = vrot.slane %v757_v10, 4  ;;  %760 = vtanh.f32 %v252_v8 }
  0xa6   :  { %v265_v12 = vsel %vm136_vm1, %v755_v7, %v263_v11 }
  0xa7   :  { %615 = vst [vmem:[%s1066_s3 + $0x10] sm:$0x77] %v265_v12 }
  0xa8   :  { %v240_v13 = vpop.f32.mrf.mxu2  ;;  %v253_v16 = vpop.f32.mrf.mxu3 }
  0xa9   :  { %v759_v15 = vpop.eup %758  ;;  %v341_v17 = vpop.f32.mrf.mxu0 }
  0xaa   :  { %v761_v18 = vpop.eup %760  ;;  %v354_v19 = vpop.f32.mrf.mxu1  ;;  %v342_v20 = vadd.f32 %v341_v17, %v287_v14 }
  0xab   :  { %v264_v21 = vrot.slane %v761_v18, 4  ;;  %v355_v22 = vadd.f32 %v354_v19, %v287_v14 }
  0xac   :  { %762 = vtanh.f32 %v342_v20 }
  0xad   :  { %v266_v23 = vsel %vm136_vm1, %v759_v15, %v264_v21  ;;  %764 = vtanh.f32 %v355_v22 }
  0xae   :  { %616 = vst [vmem:[%s1066_s3 + $0x18] sm:$0x77] %v266_v23 }
  0xb0   :  { %v367_v24 = vpop.f32.mrf.mxu2  ;;  %v380_v26 = vpop.f32.mrf.mxu3 }
  0xb1   :  { %v368_v25 = vadd.f32 %v367_v24, %v287_v14  ;;  %v343_v27 = vpop.f32.mrf.mxu0  ;;  %v381_v29 = vadd.f32 %v380_v26, %v287_v14 }
  0xb2   :  { %v763_v28 = vpop.eup %762  ;;  %v356_v30 = vpop.f32.mrf.mxu1 }
  0xb3   :  { %v765_v31 = vpop.eup %764  ;;  %766 = vtanh.f32 %v368_v25 }
  0xb4   :  { %v392_v32 = vrot.slane %v765_v31, 4  ;;  %768 = vtanh.f32 %v381_v29 }
  0xb6   :  { %v394_v33 = vsel %vm136_vm1, %v763_v28, %v392_v32 }
  0xb7   :  { %662 = vst [vmem:[%s1066_s3 + $0x20] sm:$0x77] %v394_v33 }
  0xb8   :  { %v369_v34 = vpop.f32.mrf.mxu2  ;;  %v382_v36 = vpop.f32.mrf.mxu3 }
  0xb9   :  { %v767_v35 = vpop.eup %766  ;;  %v470_v37 = vpop.f32.mrf.mxu0 }
  0xba   :  { %v769_v38 = vpop.eup %768  ;;  %v483_v40 = vpop.f32.mrf.mxu1  ;;  %v471_v42 = vadd.f32 %v470_v37, %v416_v39 }
  0xbb   :  { %v393_v41 = vrot.slane %v769_v38, 4  ;;  %v484_v43 = vadd.f32 %v483_v40, %v416_v39 }
  0xbd   :  { %v395_v44 = vsel %vm136_vm1, %v767_v35, %v393_v41  ;;  %770 = vtanh.f32 %v484_v43 }
  0xbe   :  { %663 = vst [vmem:[%s1066_s3 + $0x28] sm:$0x77] %v395_v44  ;;  %772 = vtanh.f32 %v471_v42 }
  0xc0   :  { %v496_v45 = vpop.f32.mrf.mxu2  ;;  %v509_v46 = vpop.f32.mrf.mxu3 }
  0xc1   :  { %v472_v47 = vpop.f32.mrf.mxu0  ;;  %v497_v48 = vadd.f32 %v496_v45, %v416_v39  ;;  %v510_v49 = vadd.f32 %v509_v46, %v416_v39 }
  0xc2   :  { %v485_v50 = vpop.f32.mrf.mxu1 }
  0xc3   :  { %v771_v51 = vpop.eup %770  ;;  %774 = vtanh.f32 %v510_v49 }
  0xc4   :  { %v521_v52 = vrot.slane %v771_v51, 4  ;;  %v773_v53 = vpop.eup %772  ;;  %776 = vtanh.f32 %v497_v48 }
  0xc6   :  { %v523_v54 = vsel %vm136_vm1, %v773_v53, %v521_v52 }
  0xc7   :  { %709 = vst [vmem:[%s1066_s3 + $0x30] sm:$0x77] %v523_v54 }
  0xc8   :  { %v498_v55 = vpop.f32.mrf.mxu2  ;;  %v511_v56 = vpop.f32.mrf.mxu3 }
  0xc9   :  { %v775_v57 = vpop.eup %774 }
  0xca   :  { %v522_v58 = vrot.slane %v775_v57, 4  ;;  %v777_v59 = vpop.eup %776 }
  0xcc   :  { %v524_v60 = vsel %vm136_vm1, %v777_v59, %v522_v58 }
  0xcd   :  { %710 = vst [vmem:[%s1066_s3 + $0x38] sm:$0x77] %v524_v60 }

</bundles_post_ra>
